<compile_context>
chip_gen: v5e
topology: v5e:2x2
jax: 0.10.0
libtpu: 0.0.40
codegen_flags: <defaults>
</compile_context>

<pallas_src>
import functools

import jax
import jax.numpy as jnp
from jax.experimental import pallas as pl

LN_EPS = 1e-5


def _layernorm(x, w, b):
    # single pass: both cross-lane reductions issue back-to-back
    mu = jnp.mean(x, axis=-1, keepdims=True)
    ms = jnp.mean(x * x, axis=-1, keepdims=True)
    var = ms - mu * mu
    return (x - mu) * jax.lax.rsqrt(var + LN_EPS) * w + b


def _gelu_exact(x):
    # matches torch nn.GELU() default (erf-based)
    return 0.5 * x * (1.0 + jax.lax.erf(x * 0.7071067811865476))


# ----------------------------------------------------------------------------
# Single fused kernel: embed -> n_layer x (PreNorm Attn + PreNorm MLP) -> head
# ----------------------------------------------------------------------------
def fused_forward_kernel(
        x_ref, w_emb_ref, pos_ref,
        ln1w_ref, ln1b_ref, wq_ref, wk_ref, wv_ref, wo_ref, bo_ref,
        ln2w_ref, ln2b_ref, w1_ref, b1_ref, w2_ref, b2_ref,
        hw1o_ref, hw1a_ref, hb1_ref, hw2t_ref, hb2_ref,
        out_ref,
        *, n_layer, heads, dim_head, B, T, D):
    N = 2 * T
    R = B * N
    bf = jnp.bfloat16

    # ---- fused obs+act token embedding: one matmul, biases folded into pos ----
    tok = jnp.dot(x_ref[...], w_emb_ref[...],
                  preferred_element_type=jnp.float32)                       # (R, D)
    xf = (tok.reshape(B, N, D) + pos_ref[...]).reshape(R, D)

    for l in range(n_layer):
        # ---- PreNorm ScaleDot attention ----
        xn = _layernorm(xf, ln1w_ref[l], ln1b_ref[l])
        xb = jnp.broadcast_to(xn.astype(bf)[None], (heads, R, D))
        # per-head batched projections (no lane slices, no concats);
        # attention scale dim_head**-0.5 is folded into wq at init.
        q = jnp.einsum('hrd,hdk->hrk', xb, wq_ref[l],
                       preferred_element_type=jnp.float32)
        k = jnp.einsum('hrd,hdk->hrk', xb, wk_ref[l],
                       preferred_element_type=jnp.float32)
        v = jnp.einsum('hrd,hdk->hrk', xb, wv_ref[l],
                       preferred_element_type=jnp.float32)
        # (heads, B*N, dh) -> (heads*B, N, dh): contiguous row regrouping only.
        q = q.reshape(heads * B, N, dim_head).astype(bf)
        k = k.reshape(heads * B, N, dim_head).astype(bf)
        v = v.reshape(heads * B, N, dim_head).astype(bf)

        dots = jnp.einsum('gqd,gkd->gqk', q, k,
                          preferred_element_type=jnp.float32)               # (hB, N, N)
        dots = dots - jnp.max(dots, axis=-1, keepdims=True)
        e = jnp.exp(dots)
        # approx reciprocal lands on the EUP slot; swap to exact division if
        # bit-level softmax parity with the PyTorch module is ever required.
        attn = e * pl.reciprocal(jnp.sum(e, axis=-1, keepdims=True), approx=True)
        ctx = jnp.einsum('gqk,gkd->gqd', attn.astype(bf), v,
                         preferred_element_type=jnp.float32)                # (hB, N, dh)

        # output projection: per-head batched matmul summed over heads
        # (replaces the lane-concat of head outputs).
        ctx = ctx.reshape(heads, R, dim_head).astype(bf)
        proj = jnp.einsum('hrd,hde->hre', ctx, wo_ref[l],
                          preferred_element_type=jnp.float32)               # (heads, R, D)
        xf = xf + jnp.sum(proj, axis=0) + bo_ref[l]

        # ---- PreNorm MLP ----
        xn2 = _layernorm(xf, ln2w_ref[l], ln2b_ref[l])
        h1 = jnp.dot(xn2.astype(bf), w1_ref[l],
                     preferred_element_type=jnp.float32) + b1_ref[l]
        h1 = _gelu_exact(h1)
        xf = xf + jnp.dot(h1.astype(bf), w2_ref[l],
                          preferred_element_type=jnp.float32) + b2_ref[l]

    # ---- head: last obs / last act tokens -> Linear -> Swish -> Linear(1) ----
    x3 = xf.reshape(B, N, D)
    last_o = x3[:, T - 1, :]                     # == interleaved[:, -2]
    last_a = x3[:, N - 1, :]                     # == interleaved[:, -1]
    # hw1 pre-split into obs/act halves -> no (B, 2D) lane concat.
    hh = (jnp.dot(last_o.astype(bf), hw1o_ref[...],
                  preferred_element_type=jnp.float32)
          + jnp.dot(last_a.astype(bf), hw1a_ref[...],
                    preferred_element_type=jnp.float32)
          + hb1_ref[...])
    hh = hh * jax.nn.sigmoid(hh)                 # Swish (f32)
    # lane-dense (1, B) output (batch on lanes); wrapper reshapes to (B, 1).
    out_ref[...] = (jnp.einsum('od,bd->ob', hw2t_ref[...], hh.astype(bf),
                               preferred_element_type=jnp.float32)
                    + hb2_ref[...])


# ----------------------------------------------------------------------------
# Wrapper: one gridless pallas_call, everything resident in VMEM.
# ----------------------------------------------------------------------------
def transformer_q_agent_forward(params, obs, act):
    B, T, obs_dim = obs.shape
    act_dim = act.shape[-1]
    L, heads, D, dim_head = params["wq"].shape
    N = 2 * T

    # Wrapper-side layout plumbing: one (B*2T, obs_dim+act_dim) slab with rows
    # [o_0..o_{T-1}, a_0..a_{T-1}] per batch; zero padding lets the single
    # stacked embedding weight handle both token types in one matmul.
    obs_rows = jnp.concatenate([obs, jnp.zeros((B, T, act_dim), obs.dtype)], axis=-1)
    act_rows = jnp.concatenate([jnp.zeros((B, T, obs_dim), act.dtype), act], axis=-1)
    x = jnp.concatenate([obs_rows, act_rows], axis=1).reshape(B * N, obs_dim + act_dim)

    kern = functools.partial(fused_forward_kernel, n_layer=L, heads=heads,
                             dim_head=dim_head, B=B, T=T, D=D)

    # TODO(synk): when B*N reaches a few hundred rows, add a parallel row grid
    # axis (v7x 2nd TensorCore) and stream layer weights via a layer grid axis.
    out_row = pl.pallas_call(
        kern,
        out_shape=jax.ShapeDtypeStruct((1, B), jnp.float32),
    )(x, params["w_emb"], params["pos"],
      params["ln1_w"], params["ln1_b"],
      params["wq"], params["wk"], params["wv"], params["wo"], params["bo"],
      params["ln2_w"], params["ln2_b"],
      params["w1"], params["b1"], params["w2"], params["b2"],
      params["hw1_o"], params["hw1_a"], params["hb1"],
      params["hw2_t"], params["hb2"])
    return out_row.reshape(B, 1)


# ----------------------------------------------------------------------------
# Parameter init (deterministic, synthetic), already in the kernel layout:
#  - embedding weights stacked, Linear biases folded into the positional term
#  - qkv / output-proj weights split per head, attn scale folded into wq
#  - matmul weights stored in bf16, biases / LN params in f32
# ----------------------------------------------------------------------------
def init_params(key, cfg, dim_head):
    D = cfg["n_embed"]
    heads = cfg["n_head"]
    L = cfg["n_layer"]
    inner = heads * dim_head
    mlp = 4 * D
    T = cfg["context_len"]
    obs_dim = cfg["obs_space"]
    act_dim = cfg["action_space"]
    scale = dim_head ** -0.5
    bf = jnp.bfloat16

    keys = iter(jax.random.split(key, 32))

    def dense(shape, s=0.02):
        return (s * jax.random.normal(next(keys), shape)).astype(jnp.float32)

    zeros = lambda s: jnp.zeros(s, jnp.float32)
    ones = lambda s: jnp.ones(s, jnp.float32)

    # "PyTorch layout" parameters
    w_obs, b_obs = dense((obs_dim, D)), dense((D,))
    w_act, b_act = dense((act_dim, D)), dense((D,))
    pos_obs, pos_act = dense((T, D), 1.0), dense((T, D), 1.0)
    w_qkv = dense((L, D, 3 * inner))     # columns [q | k | v], head-major inside
    w_o = dense((L, inner, D))
    hw1, hb1 = dense((2 * D, D)), dense((1, D))
    hw2, hb2 = dense((D, 1)), dense((1, 1))

    def split_heads(w):                  # (L, D, inner) -> (L, heads, D, dh)
        return w.reshape(L, D, heads, dim_head).transpose(0, 2, 1, 3)

    p = {
        # fused token embedding: obs rows then act rows (zero-padded input)
        "w_emb": jnp.concatenate([w_obs, w_act], axis=0),                    # (o+a, D)
        "pos": jnp.concatenate([pos_obs + b_obs, pos_act + b_act], axis=0),  # (2T, D)
        # attention
        "ln1_w": ones((L, 1, D)), "ln1_b": zeros((L, 1, D)),
        "wq": (split_heads(w_qkv[..., 0 * inner:1 * inner]) * scale).astype(bf),
        "wk": split_heads(w_qkv[..., 1 * inner:2 * inner]).astype(bf),
        "wv": split_heads(w_qkv[..., 2 * inner:3 * inner]).astype(bf),
        "wo": w_o.reshape(L, heads, dim_head, D).astype(bf),
        "bo": dense((L, 1, D)),
        # MLP
        "ln2_w": ones((L, 1, D)), "ln2_b": zeros((L, 1, D)),
        "w1": dense((L, D, mlp)).astype(bf), "b1": dense((L, 1, mlp)),
        "w2": dense((L, mlp, D)).astype(bf), "b2": dense((L, 1, D)),
        # embed_to_action head (hw1 split into obs/act halves, hw2 transposed)
        "hw1_o": hw1[:D].astype(bf), "hw1_a": hw1[D:].astype(bf), "hb1": hb1,
        "hw2_t": hw2.T.astype(bf), "hb2": hb2,
    }
    # TODO(synk): cls_token, sigma_param and timestep_embeding exist in
    # __init__ but are never used in forward(), so they are not materialized.
    return p


if __name__ == "__main__":
    cfg = dict(context_len=4, action_space=3, obs_space=6,
               n_embed=32, n_head=2, n_layer=2)
    dim_head = 64  # decoder_dim_head default

    key = jax.random.PRNGKey(0)
    kp, ko, ka = jax.random.split(key, 3)
    params = init_params(kp, cfg, dim_head)

    B, T = 2, cfg["context_len"]
    obs = jax.random.normal(ko, (B, T, cfg["obs_space"]), jnp.float32)
    act = jax.random.normal(ka, (B, T, cfg["action_space"]), jnp.float32)

    out = transformer_q_agent_forward(params, obs, act)
    jax.block_until_ready(out)
    assert out.shape == (B, 1), out.shape
    assert bool(jnp.all(jnp.isfinite(out)))
    print("KERNEL_OK")
</pallas_src>

<mosaic_0001>
module attributes {stable_mosaic.version = 11 : i64} {
  func.func @fused_forward_kernel(%arg0: memref<16x9xf32, #tpu.memory_space<vmem>>, %arg1: memref<9x32xf32, #tpu.memory_space<vmem>>, %arg2: memref<8x32xf32, #tpu.memory_space<vmem>>, %arg3: memref<2x1x32xf32, #tpu.memory_space<vmem>>, %arg4: memref<2x1x32xf32, #tpu.memory_space<vmem>>, %arg5: memref<2x2x32x64xbf16, #tpu.memory_space<vmem>>, %arg6: memref<2x2x32x64xbf16, #tpu.memory_space<vmem>>, %arg7: memref<2x2x32x64xbf16, #tpu.memory_space<vmem>>, %arg8: memref<2x2x64x32xbf16, #tpu.memory_space<vmem>>, %arg9: memref<2x1x32xf32, #tpu.memory_space<vmem>>, %arg10: memref<2x1x32xf32, #tpu.memory_space<vmem>>, %arg11: memref<2x1x32xf32, #tpu.memory_space<vmem>>, %arg12: memref<2x32x128xbf16, #tpu.memory_space<vmem>>, %arg13: memref<2x1x128xf32, #tpu.memory_space<vmem>>, %arg14: memref<2x128x32xbf16, #tpu.memory_space<vmem>>, %arg15: memref<2x1x32xf32, #tpu.memory_space<vmem>>, %arg16: memref<32x32xbf16, #tpu.memory_space<vmem>>, %arg17: memref<32x32xbf16, #tpu.memory_space<vmem>>, %arg18: memref<1x32xf32, #tpu.memory_space<vmem>>, %arg19: memref<1x32xbf16, #tpu.memory_space<vmem>>, %arg20: memref<1x1xf32, #tpu.memory_space<vmem>>, %arg21: memref<1x2xf32, #tpu.memory_space<vmem>>) attributes {dimension_semantics = [], scalar_prefetch = 0 : i64, scratch_operands = 0 : i64, tpu.core_type = #tpu.core_type<tc>} {
    %c0 = arith.constant 0 : index
    %c0_0 = arith.constant 0 : index
    %0 = vector.load %arg0[%c0, %c0_0] : memref<16x9xf32, #tpu.memory_space<vmem>>, vector<16x9xf32>
    %c0_1 = arith.constant 0 : index
    %c0_2 = arith.constant 0 : index
    %1 = vector.load %arg1[%c0_1, %c0_2] : memref<9x32xf32, #tpu.memory_space<vmem>>, vector<9x32xf32>
    %cst = arith.constant dense<0.000000e+00> : vector<16x32xf32>
    %2 = tpu.matmul %0, %1, %cst {dimension_numbers = #tpu.dot_dimension_numbers<[1], [0], [0], [1], [0, 0, 1, 1], [], []>} : vector<16x9xf32>, vector<9x32xf32>, vector<16x32xf32> -> vector<16x32xf32>
    %3 = vector.shape_cast %2 : vector<16x32xf32> to vector<2x8x32xf32>
    %c0_3 = arith.constant 0 : index
    %c0_4 = arith.constant 0 : index
    %4 = vector.load %arg2[%c0_3, %c0_4] : memref<8x32xf32, #tpu.memory_space<vmem>>, vector<8x32xf32>
    %5 = vector.shape_cast %4 : vector<8x32xf32> to vector<1x8x32xf32>
    %6 = vector.broadcast %5 : vector<1x8x32xf32> to vector<2x8x32xf32>
    %7 = arith.addf %3, %6 : vector<2x8x32xf32>
    %8 = vector.shape_cast %7 : vector<2x8x32xf32> to vector<16x32xf32>
    %c0_5 = arith.constant 0 : index
    %c0_6 = arith.constant 0 : index
    %c0_7 = arith.constant 0 : index
    %9 = vector.load %arg3[%c0_5, %c0_6, %c0_7] : memref<2x1x32xf32, #tpu.memory_space<vmem>>, vector<1x1x32xf32>
    %10 = vector.shape_cast %9 : vector<1x1x32xf32> to vector<1x32xf32>
    %c0_8 = arith.constant 0 : index
    %c0_9 = arith.constant 0 : index
    %c0_10 = arith.constant 0 : index
    %11 = vector.load %arg4[%c0_8, %c0_9, %c0_10] : memref<2x1x32xf32, #tpu.memory_space<vmem>>, vector<1x1x32xf32>
    %12 = vector.shape_cast %11 : vector<1x1x32xf32> to vector<1x32xf32>
    %cst_11 = arith.constant dense<0.000000e+00> : vector<16xf32>
    %13 = vector.multi_reduction <add>, %8, %cst_11 [1] : vector<16x32xf32> to vector<16xf32>
    %14 = vector.shape_cast %13 : vector<16xf32> to vector<16x1xf32>
    %cst_12 = arith.constant 3.200000e+01 : f32
    %15 = vector.broadcast %cst_12 : f32 to vector<16x1xf32>
    %16 = arith.divf %14, %15 : vector<16x1xf32>
    %17 = arith.mulf %8, %8 : vector<16x32xf32>
    %cst_13 = arith.constant dense<0.000000e+00> : vector<16xf32>
    %18 = vector.multi_reduction <add>, %17, %cst_13 [1] : vector<16x32xf32> to vector<16xf32>
    %19 = vector.shape_cast %18 : vector<16xf32> to vector<16x1xf32>
    %cst_14 = arith.constant 3.200000e+01 : f32
    %20 = vector.broadcast %cst_14 : f32 to vector<16x1xf32>
    %21 = arith.divf %19, %20 : vector<16x1xf32>
    %22 = arith.mulf %16, %16 : vector<16x1xf32>
    %23 = arith.subf %21, %22 : vector<16x1xf32>
    %24 = vector.broadcast %16 : vector<16x1xf32> to vector<16x32xf32>
    %25 = arith.subf %8, %24 : vector<16x32xf32>
    %cst_15 = arith.constant 9.99999974E-6 : f32
    %26 = vector.broadcast %cst_15 : f32 to vector<16x1xf32>
    %27 = arith.addf %23, %26 : vector<16x1xf32>
    %28 = math.rsqrt %27 : vector<16x1xf32>
    %29 = vector.broadcast %28 : vector<16x1xf32> to vector<16x32xf32>
    %30 = arith.mulf %25, %29 : vector<16x32xf32>
    %31 = vector.broadcast %10 : vector<1x32xf32> to vector<16x32xf32>
    %32 = arith.mulf %30, %31 : vector<16x32xf32>
    %33 = vector.broadcast %12 : vector<1x32xf32> to vector<16x32xf32>
    %34 = arith.addf %32, %33 : vector<16x32xf32>
    %35 = arith.truncf %34 : vector<16x32xf32> to vector<16x32xbf16>
    %36 = vector.shape_cast %35 : vector<16x32xbf16> to vector<1x16x32xbf16>
    %37 = vector.shape_cast %36 : vector<1x16x32xbf16> to vector<1x16x32xbf16>
    %38 = vector.broadcast %37 : vector<1x16x32xbf16> to vector<2x16x32xbf16>
    %c0_16 = arith.constant 0 : index
    %c0_17 = arith.constant 0 : index
    %c0_18 = arith.constant 0 : index
    %c0_19 = arith.constant 0 : index
    %39 = vector.load %arg5[%c0_16, %c0_17, %c0_18, %c0_19] : memref<2x2x32x64xbf16, #tpu.memory_space<vmem>>, vector<1x2x32x64xbf16>
    %40 = vector.shape_cast %39 : vector<1x2x32x64xbf16> to vector<2x32x64xbf16>
    "tpu.trace_start"() <{level = 10 : i32, message = "hrd,hdk->hrk"}> : () -> ()
    %cst_20 = arith.constant dense<0.000000e+00> : vector<2x16x64xf32>
    %41 = tpu.matmul %38, %40, %cst_20 {dimension_numbers = #tpu.dot_dimension_numbers<[2], [1], [1], [2], [0, 0, 0, 1, 1, 2], [0], [0]>} : vector<2x16x32xbf16>, vector<2x32x64xbf16>, vector<2x16x64xf32> -> vector<2x16x64xf32>
    "tpu.trace_stop"() : () -> ()
    %c0_21 = arith.constant 0 : index
    %c0_22 = arith.constant 0 : index
    %c0_23 = arith.constant 0 : index
    %c0_24 = arith.constant 0 : index
    %42 = vector.load %arg6[%c0_21, %c0_22, %c0_23, %c0_24] : memref<2x2x32x64xbf16, #tpu.memory_space<vmem>>, vector<1x2x32x64xbf16>
    %43 = vector.shape_cast %42 : vector<1x2x32x64xbf16> to vector<2x32x64xbf16>
    "tpu.trace_start"() <{level = 10 : i32, message = "hrd,hdk->hrk"}> : () -> ()
    %cst_25 = arith.constant dense<0.000000e+00> : vector<2x16x64xf32>
    %44 = tpu.matmul %38, %43, %cst_25 {dimension_numbers = #tpu.dot_dimension_numbers<[2], [1], [1], [2], [0, 0, 0, 1, 1, 2], [0], [0]>} : vector<2x16x32xbf16>, vector<2x32x64xbf16>, vector<2x16x64xf32> -> vector<2x16x64xf32>
    "tpu.trace_stop"() : () -> ()
    %c0_26 = arith.constant 0 : index
    %c0_27 = arith.constant 0 : index
    %c0_28 = arith.constant 0 : index
    %c0_29 = arith.constant 0 : index
    %45 = vector.load %arg7[%c0_26, %c0_27, %c0_28, %c0_29] : memref<2x2x32x64xbf16, #tpu.memory_space<vmem>>, vector<1x2x32x64xbf16>
    %46 = vector.shape_cast %45 : vector<1x2x32x64xbf16> to vector<2x32x64xbf16>
    "tpu.trace_start"() <{level = 10 : i32, message = "hrd,hdk->hrk"}> : () -> ()
    %cst_30 = arith.constant dense<0.000000e+00> : vector<2x16x64xf32>
    %47 = tpu.matmul %38, %46, %cst_30 {dimension_numbers = #tpu.dot_dimension_numbers<[2], [1], [1], [2], [0, 0, 0, 1, 1, 2], [0], [0]>} : vector<2x16x32xbf16>, vector<2x32x64xbf16>, vector<2x16x64xf32> -> vector<2x16x64xf32>
    "tpu.trace_stop"() : () -> ()
    %48 = vector.shape_cast %41 : vector<2x16x64xf32> to vector<4x8x64xf32>
    %49 = arith.truncf %48 : vector<4x8x64xf32> to vector<4x8x64xbf16>
    %50 = vector.shape_cast %44 : vector<2x16x64xf32> to vector<4x8x64xf32>
    %51 = arith.truncf %50 : vector<4x8x64xf32> to vector<4x8x64xbf16>
    %52 = vector.shape_cast %47 : vector<2x16x64xf32> to vector<4x8x64xf32>
    %53 = arith.truncf %52 : vector<4x8x64xf32> to vector<4x8x64xbf16>
    "tpu.trace_start"() <{level = 10 : i32, message = "gqd,gkd->gqk"}> : () -> ()
    %cst_31 = arith.constant dense<0.000000e+00> : vector<4x8x8xf32>
    %54 = tpu.matmul %49, %51, %cst_31 {dimension_numbers = #tpu.dot_dimension_numbers<[2], [2], [1], [1], [0, 0, 0, 1, 1, 1], [0], [0]>} : vector<4x8x64xbf16>, vector<4x8x64xbf16>, vector<4x8x8xf32> -> vector<4x8x8xf32>
    "tpu.trace_stop"() : () -> ()
    %cst_32 = arith.constant dense<0xFF800000> : vector<4x8xf32>
    %55 = vector.multi_reduction <maximumf>, %54, %cst_32 [2] : vector<4x8x8xf32> to vector<4x8xf32>
    %56 = vector.shape_cast %55 : vector<4x8xf32> to vector<4x8x1xf32>
    %57 = vector.broadcast %56 : vector<4x8x1xf32> to vector<4x8x8xf32>
    %58 = arith.subf %54, %57 : vector<4x8x8xf32>
    %59 = math.exp %58 : vector<4x8x8xf32>
    %cst_33 = arith.constant dense<0.000000e+00> : vector<4x8xf32>
    %60 = vector.multi_reduction <add>, %59, %cst_33 [2] : vector<4x8x8xf32> to vector<4x8xf32>
    %61 = vector.shape_cast %60 : vector<4x8xf32> to vector<4x8x1xf32>
    %62 = tpu.reciprocal %61 {approx = true} : vector<4x8x1xf32> -> vector<4x8x1xf32>
    %63 = vector.broadcast %62 : vector<4x8x1xf32> to vector<4x8x8xf32>
    %64 = arith.mulf %59, %63 : vector<4x8x8xf32>
    %65 = arith.truncf %64 : vector<4x8x8xf32> to vector<4x8x8xbf16>
    "tpu.trace_start"() <{level = 10 : i32, message = "gqk,gkd->gqd"}> : () -> ()
    %cst_34 = arith.constant dense<0.000000e+00> : vector<4x8x64xf32>
    %66 = tpu.matmul %65, %53, %cst_34 {dimension_numbers = #tpu.dot_dimension_numbers<[2], [1], [1], [2], [0, 0, 0, 1, 1, 2], [0], [0]>} : vector<4x8x8xbf16>, vector<4x8x64xbf16>, vector<4x8x64xf32> -> vector<4x8x64xf32>
    "tpu.trace_stop"() : () -> ()
    %67 = vector.shape_cast %66 : vector<4x8x64xf32> to vector<2x16x64xf32>
    %68 = arith.truncf %67 : vector<2x16x64xf32> to vector<2x16x64xbf16>
    %c0_35 = arith.constant 0 : index
    %c0_36 = arith.constant 0 : index
    %c0_37 = arith.constant 0 : index
    %c0_38 = arith.constant 0 : index
    %69 = vector.load %arg8[%c0_35, %c0_36, %c0_37, %c0_38] : memref<2x2x64x32xbf16, #tpu.memory_space<vmem>>, vector<1x2x64x32xbf16>
    %70 = vector.shape_cast %69 : vector<1x2x64x32xbf16> to vector<2x64x32xbf16>
    "tpu.trace_start"() <{level = 10 : i32, message = "hrd,hde->hre"}> : () -> ()
    %cst_39 = arith.constant dense<0.000000e+00> : vector<2x16x32xf32>
    %71 = tpu.matmul %68, %70, %cst_39 {dimension_numbers = #tpu.dot_dimension_numbers<[2], [1], [1], [2], [0, 0, 0, 1, 1, 2], [0], [0]>} : vector<2x16x64xbf16>, vector<2x64x32xbf16>, vector<2x16x32xf32> -> vector<2x16x32xf32>
    "tpu.trace_stop"() : () -> ()
    %cst_40 = arith.constant dense<0.000000e+00> : vector<16x32xf32>
    %72 = vector.multi_reduction <add>, %71, %cst_40 [0] : vector<2x16x32xf32> to vector<16x32xf32>
    %73 = arith.addf %8, %72 : vector<16x32xf32>
    %c0_41 = arith.constant 0 : index
    %c0_42 = arith.constant 0 : index
    %c0_43 = arith.constant 0 : index
    %74 = vector.load %arg9[%c0_41, %c0_42, %c0_43] : memref<2x1x32xf32, #tpu.memory_space<vmem>>, vector<1x1x32xf32>
    %75 = vector.shape_cast %74 : vector<1x1x32xf32> to vector<1x32xf32>
    %76 = vector.broadcast %75 : vector<1x32xf32> to vector<16x32xf32>
    %77 = arith.addf %73, %76 : vector<16x32xf32>
    %c0_44 = arith.constant 0 : index
    %c0_45 = arith.constant 0 : index
    %c0_46 = arith.constant 0 : index
    %78 = vector.load %arg10[%c0_44, %c0_45, %c0_46] : memref<2x1x32xf32, #tpu.memory_space<vmem>>, vector<1x1x32xf32>
    %79 = vector.shape_cast %78 : vector<1x1x32xf32> to vector<1x32xf32>
    %c0_47 = arith.constant 0 : index
    %c0_48 = arith.constant 0 : index
    %c0_49 = arith.constant 0 : index
    %80 = vector.load %arg11[%c0_47, %c0_48, %c0_49] : memref<2x1x32xf32, #tpu.memory_space<vmem>>, vector<1x1x32xf32>
    %81 = vector.shape_cast %80 : vector<1x1x32xf32> to vector<1x32xf32>
    %cst_50 = arith.constant dense<0.000000e+00> : vector<16xf32>
    %82 = vector.multi_reduction <add>, %77, %cst_50 [1] : vector<16x32xf32> to vector<16xf32>
    %83 = vector.shape_cast %82 : vector<16xf32> to vector<16x1xf32>
    %cst_51 = arith.constant 3.200000e+01 : f32
    %84 = vector.broadcast %cst_51 : f32 to vector<16x1xf32>
    %85 = arith.divf %83, %84 : vector<16x1xf32>
    %86 = arith.mulf %77, %77 : vector<16x32xf32>
    %cst_52 = arith.constant dense<0.000000e+00> : vector<16xf32>
    %87 = vector.multi_reduction <add>, %86, %cst_52 [1] : vector<16x32xf32> to vector<16xf32>
    %88 = vector.shape_cast %87 : vector<16xf32> to vector<16x1xf32>
    %cst_53 = arith.constant 3.200000e+01 : f32
    %89 = vector.broadcast %cst_53 : f32 to vector<16x1xf32>
    %90 = arith.divf %88, %89 : vector<16x1xf32>
    %91 = arith.mulf %85, %85 : vector<16x1xf32>
    %92 = arith.subf %90, %91 : vector<16x1xf32>
    %93 = vector.broadcast %85 : vector<16x1xf32> to vector<16x32xf32>
    %94 = arith.subf %77, %93 : vector<16x32xf32>
    %cst_54 = arith.constant 9.99999974E-6 : f32
    %95 = vector.broadcast %cst_54 : f32 to vector<16x1xf32>
    %96 = arith.addf %92, %95 : vector<16x1xf32>
    %97 = math.rsqrt %96 : vector<16x1xf32>
    %98 = vector.broadcast %97 : vector<16x1xf32> to vector<16x32xf32>
    %99 = arith.mulf %94, %98 : vector<16x32xf32>
    %100 = vector.broadcast %79 : vector<1x32xf32> to vector<16x32xf32>
    %101 = arith.mulf %99, %100 : vector<16x32xf32>
    %102 = vector.broadcast %81 : vector<1x32xf32> to vector<16x32xf32>
    %103 = arith.addf %101, %102 : vector<16x32xf32>
    %104 = arith.truncf %103 : vector<16x32xf32> to vector<16x32xbf16>
    %c0_55 = arith.constant 0 : index
    %c0_56 = arith.constant 0 : index
    %c0_57 = arith.constant 0 : index
    %105 = vector.load %arg12[%c0_55, %c0_56, %c0_57] : memref<2x32x128xbf16, #tpu.memory_space<vmem>>, vector<1x32x128xbf16>
    %106 = vector.shape_cast %105 : vector<1x32x128xbf16> to vector<32x128xbf16>
    %cst_58 = arith.constant dense<0.000000e+00> : vector<16x128xf32>
    %107 = tpu.matmul %104, %106, %cst_58 {dimension_numbers = #tpu.dot_dimension_numbers<[1], [0], [0], [1], [0, 0, 1, 1], [], []>} : vector<16x32xbf16>, vector<32x128xbf16>, vector<16x128xf32> -> vector<16x128xf32>
    %c0_59 = arith.constant 0 : index
    %c0_60 = arith.constant 0 : index
    %c0_61 = arith.constant 0 : index
    %108 = vector.load %arg13[%c0_59, %c0_60, %c0_61] : memref<2x1x128xf32, #tpu.memory_space<vmem>>, vector<1x1x128xf32>
    %109 = vector.shape_cast %108 : vector<1x1x128xf32> to vector<1x128xf32>
    %110 = vector.broadcast %109 : vector<1x128xf32> to vector<16x128xf32>
    %111 = arith.addf %107, %110 : vector<16x128xf32>
    %cst_62 = arith.constant 5.000000e-01 : f32
    %112 = vector.broadcast %cst_62 : f32 to vector<16x128xf32>
    %113 = arith.mulf %112, %111 : vector<16x128xf32>
    %cst_63 = arith.constant 0.707106769 : f32
    %114 = vector.broadcast %cst_63 : f32 to vector<16x128xf32>
    %115 = arith.mulf %111, %114 : vector<16x128xf32>
    %116 = math.erf %115 : vector<16x128xf32>
    %cst_64 = arith.constant 1.000000e+00 : f32
    %117 = vector.broadcast %cst_64 : f32 to vector<16x128xf32>
    %118 = arith.addf %117, %116 : vector<16x128xf32>
    %119 = arith.mulf %113, %118 : vector<16x128xf32>
    %120 = arith.truncf %119 : vector<16x128xf32> to vector<16x128xbf16>
    %c0_65 = arith.constant 0 : index
    %c0_66 = arith.constant 0 : index
    %c0_67 = arith.constant 0 : index
    %121 = vector.load %arg14[%c0_65, %c0_66, %c0_67] : memref<2x128x32xbf16, #tpu.memory_space<vmem>>, vector<1x128x32xbf16>
    %122 = vector.shape_cast %121 : vector<1x128x32xbf16> to vector<128x32xbf16>
    %cst_68 = arith.constant dense<0.000000e+00> : vector<16x32xf32>
    %123 = tpu.matmul %120, %122, %cst_68 {dimension_numbers = #tpu.dot_dimension_numbers<[1], [0], [0], [1], [0, 0, 1, 1], [], []>} : vector<16x128xbf16>, vector<128x32xbf16>, vector<16x32xf32> -> vector<16x32xf32>
    %124 = arith.addf %77, %123 : vector<16x32xf32>
    %c0_69 = arith.constant 0 : index
    %c0_70 = arith.constant 0 : index
    %c0_71 = arith.constant 0 : index
    %125 = vector.load %arg15[%c0_69, %c0_70, %c0_71] : memref<2x1x32xf32, #tpu.memory_space<vmem>>, vector<1x1x32xf32>
    %126 = vector.shape_cast %125 : vector<1x1x32xf32> to vector<1x32xf32>
    %127 = vector.broadcast %126 : vector<1x32xf32> to vector<16x32xf32>
    %128 = arith.addf %124, %127 : vector<16x32xf32>
    %c1 = arith.constant 1 : index
    %c0_72 = arith.constant 0 : index
    %c0_73 = arith.constant 0 : index
    %129 = vector.load %arg3[%c1, %c0_72, %c0_73] : memref<2x1x32xf32, #tpu.memory_space<vmem>>, vector<1x1x32xf32>
    %130 = vector.shape_cast %129 : vector<1x1x32xf32> to vector<1x32xf32>
    %c1_74 = arith.constant 1 : index
    %c0_75 = arith.constant 0 : index
    %c0_76 = arith.constant 0 : index
    %131 = vector.load %arg4[%c1_74, %c0_75, %c0_76] : memref<2x1x32xf32, #tpu.memory_space<vmem>>, vector<1x1x32xf32>
    %132 = vector.shape_cast %131 : vector<1x1x32xf32> to vector<1x32xf32>
    %cst_77 = arith.constant dense<0.000000e+00> : vector<16xf32>
    %133 = vector.multi_reduction <add>, %128, %cst_77 [1] : vector<16x32xf32> to vector<16xf32>
    %134 = vector.shape_cast %133 : vector<16xf32> to vector<16x1xf32>
    %cst_78 = arith.constant 3.200000e+01 : f32
    %135 = vector.broadcast %cst_78 : f32 to vector<16x1xf32>
    %136 = arith.divf %134, %135 : vector<16x1xf32>
    %137 = arith.mulf %128, %128 : vector<16x32xf32>
    %cst_79 = arith.constant dense<0.000000e+00> : vector<16xf32>
    %138 = vector.multi_reduction <add>, %137, %cst_79 [1] : vector<16x32xf32> to vector<16xf32>
    %139 = vector.shape_cast %138 : vector<16xf32> to vector<16x1xf32>
    %cst_80 = arith.constant 3.200000e+01 : f32
    %140 = vector.broadcast %cst_80 : f32 to vector<16x1xf32>
    %141 = arith.divf %139, %140 : vector<16x1xf32>
    %142 = arith.mulf %136, %136 : vector<16x1xf32>
    %143 = arith.subf %141, %142 : vector<16x1xf32>
    %144 = vector.broadcast %136 : vector<16x1xf32> to vector<16x32xf32>
    %145 = arith.subf %128, %144 : vector<16x32xf32>
    %cst_81 = arith.constant 9.99999974E-6 : f32
    %146 = vector.broadcast %cst_81 : f32 to vector<16x1xf32>
    %147 = arith.addf %143, %146 : vector<16x1xf32>
    %148 = math.rsqrt %147 : vector<16x1xf32>
    %149 = vector.broadcast %148 : vector<16x1xf32> to vector<16x32xf32>
    %150 = arith.mulf %145, %149 : vector<16x32xf32>
    %151 = vector.broadcast %130 : vector<1x32xf32> to vector<16x32xf32>
    %152 = arith.mulf %150, %151 : vector<16x32xf32>
    %153 = vector.broadcast %132 : vector<1x32xf32> to vector<16x32xf32>
    %154 = arith.addf %152, %153 : vector<16x32xf32>
    %155 = arith.truncf %154 : vector<16x32xf32> to vector<16x32xbf16>
    %156 = vector.shape_cast %155 : vector<16x32xbf16> to vector<1x16x32xbf16>
    %157 = vector.shape_cast %156 : vector<1x16x32xbf16> to vector<1x16x32xbf16>
    %158 = vector.broadcast %157 : vector<1x16x32xbf16> to vector<2x16x32xbf16>
    %c1_82 = arith.constant 1 : index
    %c0_83 = arith.constant 0 : index
    %c0_84 = arith.constant 0 : index
    %c0_85 = arith.constant 0 : index
    %159 = vector.load %arg5[%c1_82, %c0_83, %c0_84, %c0_85] : memref<2x2x32x64xbf16, #tpu.memory_space<vmem>>, vector<1x2x32x64xbf16>
    %160 = vector.shape_cast %159 : vector<1x2x32x64xbf16> to vector<2x32x64xbf16>
    "tpu.trace_start"() <{level = 10 : i32, message = "hrd,hdk->hrk"}> : () -> ()
    %cst_86 = arith.constant dense<0.000000e+00> : vector<2x16x64xf32>
    %161 = tpu.matmul %158, %160, %cst_86 {dimension_numbers = #tpu.dot_dimension_numbers<[2], [1], [1], [2], [0, 0, 0, 1, 1, 2], [0], [0]>} : vector<2x16x32xbf16>, vector<2x32x64xbf16>, vector<2x16x64xf32> -> vector<2x16x64xf32>
    "tpu.trace_stop"() : () -> ()
    %c1_87 = arith.constant 1 : index
    %c0_88 = arith.constant 0 : index
    %c0_89 = arith.constant 0 : index
    %c0_90 = arith.constant 0 : index
    %162 = vector.load %arg6[%c1_87, %c0_88, %c0_89, %c0_90] : memref<2x2x32x64xbf16, #tpu.memory_space<vmem>>, vector<1x2x32x64xbf16>
    %163 = vector.shape_cast %162 : vector<1x2x32x64xbf16> to vector<2x32x64xbf16>
    "tpu.trace_start"() <{level = 10 : i32, message = "hrd,hdk->hrk"}> : () -> ()
    %cst_91 = arith.constant dense<0.000000e+00> : vector<2x16x64xf32>
    %164 = tpu.matmul %158, %163, %cst_91 {dimension_numbers = #tpu.dot_dimension_numbers<[2], [1], [1], [2], [0, 0, 0, 1, 1, 2], [0], [0]>} : vector<2x16x32xbf16>, vector<2x32x64xbf16>, vector<2x16x64xf32> -> vector<2x16x64xf32>
    "tpu.trace_stop"() : () -> ()
    %c1_92 = arith.constant 1 : index
    %c0_93 = arith.constant 0 : index
    %c0_94 = arith.constant 0 : index
    %c0_95 = arith.constant 0 : index
    %165 = vector.load %arg7[%c1_92, %c0_93, %c0_94, %c0_95] : memref<2x2x32x64xbf16, #tpu.memory_space<vmem>>, vector<1x2x32x64xbf16>
    %166 = vector.shape_cast %165 : vector<1x2x32x64xbf16> to vector<2x32x64xbf16>
    "tpu.trace_start"() <{level = 10 : i32, message = "hrd,hdk->hrk"}> : () -> ()
    %cst_96 = arith.constant dense<0.000000e+00> : vector<2x16x64xf32>
    %167 = tpu.matmul %158, %166, %cst_96 {dimension_numbers = #tpu.dot_dimension_numbers<[2], [1], [1], [2], [0, 0, 0, 1, 1, 2], [0], [0]>} : vector<2x16x32xbf16>, vector<2x32x64xbf16>, vector<2x16x64xf32> -> vector<2x16x64xf32>
    "tpu.trace_stop"() : () -> ()
    %168 = vector.shape_cast %161 : vector<2x16x64xf32> to vector<4x8x64xf32>
    %169 = arith.truncf %168 : vector<4x8x64xf32> to vector<4x8x64xbf16>
    %170 = vector.shape_cast %164 : vector<2x16x64xf32> to vector<4x8x64xf32>
    %171 = arith.truncf %170 : vector<4x8x64xf32> to vector<4x8x64xbf16>
    %172 = vector.shape_cast %167 : vector<2x16x64xf32> to vector<4x8x64xf32>
    %173 = arith.truncf %172 : vector<4x8x64xf32> to vector<4x8x64xbf16>
    "tpu.trace_start"() <{level = 10 : i32, message = "gqd,gkd->gqk"}> : () -> ()
    %cst_97 = arith.constant dense<0.000000e+00> : vector<4x8x8xf32>
    %174 = tpu.matmul %169, %171, %cst_97 {dimension_numbers = #tpu.dot_dimension_numbers<[2], [2], [1], [1], [0, 0, 0, 1, 1, 1], [0], [0]>} : vector<4x8x64xbf16>, vector<4x8x64xbf16>, vector<4x8x8xf32> -> vector<4x8x8xf32>
    "tpu.trace_stop"() : () -> ()
    %cst_98 = arith.constant dense<0xFF800000> : vector<4x8xf32>
    %175 = vector.multi_reduction <maximumf>, %174, %cst_98 [2] : vector<4x8x8xf32> to vector<4x8xf32>
    %176 = vector.shape_cast %175 : vector<4x8xf32> to vector<4x8x1xf32>
    %177 = vector.broadcast %176 : vector<4x8x1xf32> to vector<4x8x8xf32>
    %178 = arith.subf %174, %177 : vector<4x8x8xf32>
    %179 = math.exp %178 : vector<4x8x8xf32>
    %cst_99 = arith.constant dense<0.000000e+00> : vector<4x8xf32>
    %180 = vector.multi_reduction <add>, %179, %cst_99 [2] : vector<4x8x8xf32> to vector<4x8xf32>
    %181 = vector.shape_cast %180 : vector<4x8xf32> to vector<4x8x1xf32>
    %182 = tpu.reciprocal %181 {approx = true} : vector<4x8x1xf32> -> vector<4x8x1xf32>
    %183 = vector.broadcast %182 : vector<4x8x1xf32> to vector<4x8x8xf32>
    %184 = arith.mulf %179, %183 : vector<4x8x8xf32>
    %185 = arith.truncf %184 : vector<4x8x8xf32> to vector<4x8x8xbf16>
    "tpu.trace_start"() <{level = 10 : i32, message = "gqk,gkd->gqd"}> : () -> ()
    %cst_100 = arith.constant dense<0.000000e+00> : vector<4x8x64xf32>
    %186 = tpu.matmul %185, %173, %cst_100 {dimension_numbers = #tpu.dot_dimension_numbers<[2], [1], [1], [2], [0, 0, 0, 1, 1, 2], [0], [0]>} : vector<4x8x8xbf16>, vector<4x8x64xbf16>, vector<4x8x64xf32> -> vector<4x8x64xf32>
    "tpu.trace_stop"() : () -> ()
    %187 = vector.shape_cast %186 : vector<4x8x64xf32> to vector<2x16x64xf32>
    %188 = arith.truncf %187 : vector<2x16x64xf32> to vector<2x16x64xbf16>
    %c1_101 = arith.constant 1 : index
    %c0_102 = arith.constant 0 : index
    %c0_103 = arith.constant 0 : index
    %c0_104 = arith.constant 0 : index
    %189 = vector.load %arg8[%c1_101, %c0_102, %c0_103, %c0_104] : memref<2x2x64x32xbf16, #tpu.memory_space<vmem>>, vector<1x2x64x32xbf16>
    %190 = vector.shape_cast %189 : vector<1x2x64x32xbf16> to vector<2x64x32xbf16>
    "tpu.trace_start"() <{level = 10 : i32, message = "hrd,hde->hre"}> : () -> ()
    %cst_105 = arith.constant dense<0.000000e+00> : vector<2x16x32xf32>
    %191 = tpu.matmul %188, %190, %cst_105 {dimension_numbers = #tpu.dot_dimension_numbers<[2], [1], [1], [2], [0, 0, 0, 1, 1, 2], [0], [0]>} : vector<2x16x64xbf16>, vector<2x64x32xbf16>, vector<2x16x32xf32> -> vector<2x16x32xf32>
    "tpu.trace_stop"() : () -> ()
    %cst_106 = arith.constant dense<0.000000e+00> : vector<16x32xf32>
    %192 = vector.multi_reduction <add>, %191, %cst_106 [0] : vector<2x16x32xf32> to vector<16x32xf32>
    %193 = arith.addf %128, %192 : vector<16x32xf32>
    %c1_107 = arith.constant 1 : index
    %c0_108 = arith.constant 0 : index
    %c0_109 = arith.constant 0 : index
    %194 = vector.load %arg9[%c1_107, %c0_108, %c0_109] : memref<2x1x32xf32, #tpu.memory_space<vmem>>, vector<1x1x32xf32>
    %195 = vector.shape_cast %194 : vector<1x1x32xf32> to vector<1x32xf32>
    %196 = vector.broadcast %195 : vector<1x32xf32> to vector<16x32xf32>
    %197 = arith.addf %193, %196 : vector<16x32xf32>
    %c1_110 = arith.constant 1 : index
    %c0_111 = arith.constant 0 : index
    %c0_112 = arith.constant 0 : index
    %198 = vector.load %arg10[%c1_110, %c0_111, %c0_112] : memref<2x1x32xf32, #tpu.memory_space<vmem>>, vector<1x1x32xf32>
    %199 = vector.shape_cast %198 : vector<1x1x32xf32> to vector<1x32xf32>
    %c1_113 = arith.constant 1 : index
    %c0_114 = arith.constant 0 : index
    %c0_115 = arith.constant 0 : index
    %200 = vector.load %arg11[%c1_113, %c0_114, %c0_115] : memref<2x1x32xf32, #tpu.memory_space<vmem>>, vector<1x1x32xf32>
    %201 = vector.shape_cast %200 : vector<1x1x32xf32> to vector<1x32xf32>
    %cst_116 = arith.constant dense<0.000000e+00> : vector<16xf32>
    %202 = vector.multi_reduction <add>, %197, %cst_116 [1] : vector<16x32xf32> to vector<16xf32>
    %203 = vector.shape_cast %202 : vector<16xf32> to vector<16x1xf32>
    %cst_117 = arith.constant 3.200000e+01 : f32
    %204 = vector.broadcast %cst_117 : f32 to vector<16x1xf32>
    %205 = arith.divf %203, %204 : vector<16x1xf32>
    %206 = arith.mulf %197, %197 : vector<16x32xf32>
    %cst_118 = arith.constant dense<0.000000e+00> : vector<16xf32>
    %207 = vector.multi_reduction <add>, %206, %cst_118 [1] : vector<16x32xf32> to vector<16xf32>
    %208 = vector.shape_cast %207 : vector<16xf32> to vector<16x1xf32>
    %cst_119 = arith.constant 3.200000e+01 : f32
    %209 = vector.broadcast %cst_119 : f32 to vector<16x1xf32>
    %210 = arith.divf %208, %209 : vector<16x1xf32>
    %211 = arith.mulf %205, %205 : vector<16x1xf32>
    %212 = arith.subf %210, %211 : vector<16x1xf32>
    %213 = vector.broadcast %205 : vector<16x1xf32> to vector<16x32xf32>
    %214 = arith.subf %197, %213 : vector<16x32xf32>
    %cst_120 = arith.constant 9.99999974E-6 : f32
    %215 = vector.broadcast %cst_120 : f32 to vector<16x1xf32>
    %216 = arith.addf %212, %215 : vector<16x1xf32>
    %217 = math.rsqrt %216 : vector<16x1xf32>
    %218 = vector.broadcast %217 : vector<16x1xf32> to vector<16x32xf32>
    %219 = arith.mulf %214, %218 : vector<16x32xf32>
    %220 = vector.broadcast %199 : vector<1x32xf32> to vector<16x32xf32>
    %221 = arith.mulf %219, %220 : vector<16x32xf32>
    %222 = vector.broadcast %201 : vector<1x32xf32> to vector<16x32xf32>
    %223 = arith.addf %221, %222 : vector<16x32xf32>
    %224 = arith.truncf %223 : vector<16x32xf32> to vector<16x32xbf16>
    %c1_121 = arith.constant 1 : index
    %c0_122 = arith.constant 0 : index
    %c0_123 = arith.constant 0 : index
    %225 = vector.load %arg12[%c1_121, %c0_122, %c0_123] : memref<2x32x128xbf16, #tpu.memory_space<vmem>>, vector<1x32x128xbf16>
    %226 = vector.shape_cast %225 : vector<1x32x128xbf16> to vector<32x128xbf16>
    %cst_124 = arith.constant dense<0.000000e+00> : vector<16x128xf32>
    %227 = tpu.matmul %224, %226, %cst_124 {dimension_numbers = #tpu.dot_dimension_numbers<[1], [0], [0], [1], [0, 0, 1, 1], [], []>} : vector<16x32xbf16>, vector<32x128xbf16>, vector<16x128xf32> -> vector<16x128xf32>
    %c1_125 = arith.constant 1 : index
    %c0_126 = arith.constant 0 : index
    %c0_127 = arith.constant 0 : index
    %228 = vector.load %arg13[%c1_125, %c0_126, %c0_127] : memref<2x1x128xf32, #tpu.memory_space<vmem>>, vector<1x1x128xf32>
    %229 = vector.shape_cast %228 : vector<1x1x128xf32> to vector<1x128xf32>
    %230 = vector.broadcast %229 : vector<1x128xf32> to vector<16x128xf32>
    %231 = arith.addf %227, %230 : vector<16x128xf32>
    %cst_128 = arith.constant 5.000000e-01 : f32
    %232 = vector.broadcast %cst_128 : f32 to vector<16x128xf32>
    %233 = arith.mulf %232, %231 : vector<16x128xf32>
    %cst_129 = arith.constant 0.707106769 : f32
    %234 = vector.broadcast %cst_129 : f32 to vector<16x128xf32>
    %235 = arith.mulf %231, %234 : vector<16x128xf32>
    %236 = math.erf %235 : vector<16x128xf32>
    %cst_130 = arith.constant 1.000000e+00 : f32
    %237 = vector.broadcast %cst_130 : f32 to vector<16x128xf32>
    %238 = arith.addf %237, %236 : vector<16x128xf32>
    %239 = arith.mulf %233, %238 : vector<16x128xf32>
    %240 = arith.truncf %239 : vector<16x128xf32> to vector<16x128xbf16>
    %c1_131 = arith.constant 1 : index
    %c0_132 = arith.constant 0 : index
    %c0_133 = arith.constant 0 : index
    %241 = vector.load %arg14[%c1_131, %c0_132, %c0_133] : memref<2x128x32xbf16, #tpu.memory_space<vmem>>, vector<1x128x32xbf16>
    %242 = vector.shape_cast %241 : vector<1x128x32xbf16> to vector<128x32xbf16>
    %cst_134 = arith.constant dense<0.000000e+00> : vector<16x32xf32>
    %243 = tpu.matmul %240, %242, %cst_134 {dimension_numbers = #tpu.dot_dimension_numbers<[1], [0], [0], [1], [0, 0, 1, 1], [], []>} : vector<16x128xbf16>, vector<128x32xbf16>, vector<16x32xf32> -> vector<16x32xf32>
    %244 = arith.addf %197, %243 : vector<16x32xf32>
    %c1_135 = arith.constant 1 : index
    %c0_136 = arith.constant 0 : index
    %c0_137 = arith.constant 0 : index
    %245 = vector.load %arg15[%c1_135, %c0_136, %c0_137] : memref<2x1x32xf32, #tpu.memory_space<vmem>>, vector<1x1x32xf32>
    %246 = vector.shape_cast %245 : vector<1x1x32xf32> to vector<1x32xf32>
    %247 = vector.broadcast %246 : vector<1x32xf32> to vector<16x32xf32>
    %248 = arith.addf %244, %247 : vector<16x32xf32>
    %249 = vector.shape_cast %248 : vector<16x32xf32> to vector<2x8x32xf32>
    %250 = vector.extract_strided_slice %249 {offsets = [0, 3, 0], sizes = [2, 1, 32], strides = [1, 1, 1]} : vector<2x8x32xf32> to vector<2x1x32xf32>
    %251 = vector.shape_cast %250 : vector<2x1x32xf32> to vector<2x32xf32>
    %252 = vector.extract_strided_slice %249 {offsets = [0, 7, 0], sizes = [2, 1, 32], strides = [1, 1, 1]} : vector<2x8x32xf32> to vector<2x1x32xf32>
    %253 = vector.shape_cast %252 : vector<2x1x32xf32> to vector<2x32xf32>
    %254 = arith.truncf %251 : vector<2x32xf32> to vector<2x32xbf16>
    %c0_138 = arith.constant 0 : index
    %c0_139 = arith.constant 0 : index
    %255 = vector.load %arg16[%c0_138, %c0_139] : memref<32x32xbf16, #tpu.memory_space<vmem>>, vector<32x32xbf16>
    %cst_140 = arith.constant dense<0.000000e+00> : vector<2x32xf32>
    %256 = tpu.matmul %254, %255, %cst_140 {dimension_numbers = #tpu.dot_dimension_numbers<[1], [0], [0], [1], [0, 0, 1, 1], [], []>} : vector<2x32xbf16>, vector<32x32xbf16>, vector<2x32xf32> -> vector<2x32xf32>
    %257 = arith.truncf %253 : vector<2x32xf32> to vector<2x32xbf16>
    %c0_141 = arith.constant 0 : index
    %c0_142 = arith.constant 0 : index
    %258 = vector.load %arg17[%c0_141, %c0_142] : memref<32x32xbf16, #tpu.memory_space<vmem>>, vector<32x32xbf16>
    %cst_143 = arith.constant dense<0.000000e+00> : vector<2x32xf32>
    %259 = tpu.matmul %257, %258, %cst_143 {dimension_numbers = #tpu.dot_dimension_numbers<[1], [0], [0], [1], [0, 0, 1, 1], [], []>} : vector<2x32xbf16>, vector<32x32xbf16>, vector<2x32xf32> -> vector<2x32xf32>
    %260 = arith.addf %256, %259 : vector<2x32xf32>
    %c0_144 = arith.constant 0 : index
    %c0_145 = arith.constant 0 : index
    %261 = vector.load %arg18[%c0_144, %c0_145] : memref<1x32xf32, #tpu.memory_space<vmem>>, vector<1x32xf32>
    %262 = vector.broadcast %261 : vector<1x32xf32> to vector<2x32xf32>
    %263 = arith.addf %260, %262 : vector<2x32xf32>
    %264 = arith.negf %263 : vector<2x32xf32>
    %265 = math.exp %264 : vector<2x32xf32>
    %cst_146 = arith.constant 1.000000e+00 : f32
    %266 = vector.broadcast %cst_146 : f32 to vector<2x32xf32>
    %267 = arith.addf %266, %265 : vector<2x32xf32>
    %268 = arith.divf %266, %267 : vector<2x32xf32>
    %269 = arith.mulf %263, %268 : vector<2x32xf32>
    %c0_147 = arith.constant 0 : index
    %c0_148 = arith.constant 0 : index
    %270 = vector.load %arg19[%c0_147, %c0_148] : memref<1x32xbf16, #tpu.memory_space<vmem>>, vector<1x32xbf16>
    %271 = arith.truncf %269 : vector<2x32xf32> to vector<2x32xbf16>
    "tpu.trace_start"() <{level = 10 : i32, message = "od,bd->ob"}> : () -> ()
    %cst_149 = arith.constant dense<0.000000e+00> : vector<1x2xf32>
    %272 = tpu.matmul %270, %271, %cst_149 {dimension_numbers = #tpu.dot_dimension_numbers<[1], [1], [0], [0], [0, 0, 1, 0], [], []>} : vector<1x32xbf16>, vector<2x32xbf16>, vector<1x2xf32> -> vector<1x2xf32>
    "tpu.trace_stop"() : () -> ()
    %c0_150 = arith.constant 0 : index
    %c0_151 = arith.constant 0 : index
    %273 = vector.load %arg20[%c0_150, %c0_151] : memref<1x1xf32, #tpu.memory_space<vmem>>, vector<1x1xf32>
    %274 = vector.broadcast %273 : vector<1x1xf32> to vector<1x2xf32>
    %275 = arith.addf %272, %274 : vector<1x2xf32>
    %c0_152 = arith.constant 0 : index
    %c0_153 = arith.constant 0 : index
    %276 = vector.load %arg21[%c0_152, %c0_153] : memref<1x2xf32, #tpu.memory_space<vmem>>, vector<1x2xf32>
    tpu.vector_store %arg21[%c0_152, %c0_153], %275 {strides = array<i32>} : memref<1x2xf32, #tpu.memory_space<vmem>>, vector<1x2xf32>,
    return
  }
}

</mosaic_0001>

<bundles_post_ra>
// kernel: tpu_custom_call.1
= control target key start
LH: loop header
LB: loop body
LE: loop exit
PB: predicated region body
PF: predicated region fallthrough
CT: control target
= control target key end

     0   :  { %s3127_s0 = inlined_call_operand.vmem [shape: f32[16,9], index: 0, kind: input, shape index: {}]   ;;  %s3128_s1 = inlined_call_operand.vmem [shape: f32[9,32], index: 1, kind: input, shape index: {}]   ;;  %s3129_s2 = inlined_call_operand.vmem [shape: f32[8,32], index: 2, kind: input, shape index: {}]   ;;  %s3130_s3 = inlined_call_operand.vmem [shape: f32[2,1,32], index: 3, kind: input, shape index: {}]   ;;  %s3131_s4 = inlined_call_operand.vmem [shape: f32[2,1,32], index: 4, kind: input, shape index: {}]   ;;  %s3132_s5 = inlined_call_operand.vmem [shape: bf16[2,2,32,64], index: 5, kind: input, shape index: {}]   ;;  %s3133_s6 = inlined_call_operand.vmem [shape: bf16[2,2,32,64], index: 6, kind: input, shape index: {}]   ;;  %s3134_s7 = inlined_call_operand.vmem [shape: bf16[2,2,32,64], index: 7, kind: input, shape index: {}]   ;;  %s3135_s8 = inlined_call_operand.vmem [shape: bf16[2,2,64,32], index: 8, kind: input, shape index: {}]   ;;  %s3136_s9 = inlined_call_operand.vmem [shape: f32[2,1,32], index: 9, kind: input, shape index: {}]   ;;  %s3137_s10 = inlined_call_operand.vmem [shape: f32[2,1,32], index: 10, kind: input, shape index: {}]   ;;  %s3138_s11 = inlined_call_operand.vmem [shape: f32[2,1,32], index: 11, kind: input, shape index: {}]   ;;  %s3139_s12 = inlined_call_operand.vmem [shape: bf16[2,32,128], index: 12, kind: input, shape index: {}]   ;;  %s3140_s13 = inlined_call_operand.vmem [shape: f32[2,1,128], index: 13, kind: input, shape index: {}]   ;;  %s3141_s14 = inlined_call_operand.vmem [shape: bf16[2,128,32], index: 14, kind: input, shape index: {}]   ;;  %s3142_s15 = inlined_call_operand.vmem [shape: f32[2,1,32], index: 15, kind: input, shape index: {}]   ;;  %s3143_s16 = inlined_call_operand.vmem [shape: bf16[32,32], index: 16, kind: input, shape index: {}]   ;;  %s3144_s17 = inlined_call_operand.vmem [shape: bf16[32,32], index: 17, kind: input, shape index: {}]   ;;  %s3145_s18 = inlined_call_operand.vmem [shape: f32[1,32], index: 18, kind: input, shape index: {}]   ;;  %s3146_s19 = inlined_call_operand.vmem [shape: bf16[1,32], index: 19, kind: input, shape index: {}]   ;;  %s3147_s20 = inlined_call_operand.<no memory space> [shape: f32[1,1], index: 20, kind: input, shape index: {}]   ;;  %s3148_s21 = inlined_call_operand.hbm [shape: f32[1,2], index: 21, kind: output, shape index: {}]  }
   0x1   :  { %3154 = sst [smem:[#allocation6_spill]] %s3127_s0  ;;  %v26_v0 = vstv %s3147_s20 }
   0x2   :  { %3155 = sst [smem:[#allocation7_spill]] %s3128_s1  ;;  %27 = vst [vmem:[#allocation2] sm:$0x1] %v26_v0 }
   0x3   :  { %3156 = sst [smem:[#allocation8_spill]] %s3129_s2 }
   0x4   :  { %3157 = sst [smem:[#allocation9_spill]] %s3130_s3 }
   0x5   :  { %3158 = sst [smem:[#allocation10_spill]] %s3131_s4 }
   0x6   :  { %3159 = sst [smem:[#allocation11_spill]] %s3132_s5 }
   0x7   :  { %s3160_s3 = sld [smem:[#allocation7_spill]]  ;;  %vm83_vm0 = vcmask 1040384   ;;  %vm76_vm1 = vcmask 72704  }
   0x8   :  { %s3161_s30 = sld [smem:[#allocation6_spill]] }
   0xd   :  { %v75_v1 = vld [vmem:[%s3160_s3 + $0x8] sm:$0x1]  ;;  %v74_v2 = vld [vmem:[%s3160_s3] sm:$0xff] }
   0xe   :  { %2009 = vmatpush.msk.msra.mxu0 %vm83_vm0, %v75_v1  ;;  %v72_v3 = vld [vmem:[%s3161_s30] sm:$0xff] }
  0x10   :  { %102 = vmatpush.msra.mxu0 %v74_v2 }
  0x11   :  { %2010 = vmatmul.msk.f32.vlgmr.msra.gmra.mxu0 %vm76_vm1, %v72_v3 }
  0x12   :  { %28 = vsyncpa [#allocation4], 0  ;;  %v73_v4 = vld [vmem:[%s3161_s30 + $0x8] sm:$0xff]  ;;  %s3162_s1 = sld [smem:[#allocation8_spill]]  ;;  %vm115_vm2 = vcmask 261120   ;;  %v2549_v16 = vmov 32.0  }
  0x13   :  { %2461 = vrcp.f32 %v2549_v16  ;;  %s3163_s25 = sld [smem:[#allocation11_spill]]  ;;  %v2382_v31 = vld [vmem:[%s3133_s6 + $0x8] sm:$0xff]  ;;  %v2384_v33 = vld [vmem:[%s3133_s6 + $0x18] sm:$0xff]  ;;  %v2381_v39 = vld [vmem:[%s3133_s6] sm:$0xff]  ;;  %vm383_vm10 = vcmask 523264   ;;  %vm512_vm11 = vcmask 1043456  }
  0x14   :  { %277 = vmatpush.bf16.msra.mxu3 %v2382_v31  ;;  %303 = vmatpush.bf16.msrb.mxu0 %v2384_v33  ;;  %v2383_v42 = vld [vmem:[%s3133_s6 + $0x10] sm:$0xff]  ;;  %v2386_v47 = vld [vmem:[%s3134_s7 + $0x8] sm:$0xff]  ;;  %v2388_v48 = vld [vmem:[%s3134_s7 + $0x18] sm:$0xff]  ;;  %s3164_s5 = sld [smem:[#allocation9_spill]]  ;;  %vm460_vm12 = vcmask 64512   ;;  %s2551_s20 = smov [#allocation3]  }
  0x15   :  { %v2385_v50 = vld [vmem:[%s3134_s7] sm:$0xff]  ;;  %v2387_v51 = vld [vmem:[%s3134_s7 + $0x10] sm:$0xff]  ;;  %s2000_s23 = sshll.u32 %s3148_s21, 4  ;;  %s2001_s23 = int_to_ptr.hbm [resolvable:$true] %s2000_s23 }
  0x18   :  { %v110_v5 = vld [vmem:[%s3162_s1] sm:$0xff]  ;;  %278 = vmatpush.bf16.msra.mxu3 %v2381_v39  ;;  %304 = vmatpush.bf16.msrb.mxu0 %v2383_v42  ;;  %s3165_s1 = sld [smem:[#allocation10_spill]] }
  0x19   :  { %2011 = vmatmul.msk.f32.gmra.mxu0 %vm76_vm1, %v73_v4  ;;  %v2462_v17 = vpop.eup %2461  ;;  %v2378_v29 = vld [vmem:[%s3163_s25 + $0x8] sm:$0xff]  ;;  %v2380_v30 = vld [vmem:[%s3163_s25 + $0x18] sm:$0xff]  ;;  %v2377_v37 = vld [vmem:[%s3163_s25] sm:$0xff] }
  0x1a   :  { %v123_v18 = vmul.f32 32.0, %v2462_v17  ;;  %vm127_vm3 = vweird.f32 %v2462_v17  ;;  %217 = vmatpush.bf16.msra.mxu1 %v2378_v29  ;;  %243 = vmatpush.bf16.msra.mxu2 %v2380_v30  ;;  %v2379_v38 = vld [vmem:[%s3163_s25 + $0x10] sm:$0xff]  ;;  %v2446_v60 = vld [vmem:[%s3164_s5] ss:$0 sm:$0xff] }
  0x1c   :  { %v124_v19 = vsub.f32 1.0, %v123_v18 }
  0x1e   :  { %v125_v20 = vmul.f32 %v2462_v17, %v124_v19  ;;  %218 = vmatpush.bf16.msra.mxu1 %v2377_v37  ;;  %244 = vmatpush.bf16.msra.mxu2 %v2379_v38  ;;  %v2447_v0 = vld [vmem:[%s3165_s1] ss:$0 sm:$0xff] }
  0x20   :  { %v126_v21 = vadd.f32 %v2462_v17, %v125_v20 }
  0x22   :  { %v2694_v22 = vsel %vm127_vm3, %v2462_v17, %v126_v21  ;;  %337 = vmatpush.bf16.msrb.mxu1 %v2386_v47  ;;  %363 = vmatpush.bf16.msrb.mxu2 %v2388_v48 }
  0x26   :  { %338 = vmatpush.bf16.msrb.mxu1 %v2385_v50  ;;  %364 = vmatpush.bf16.msrb.mxu2 %v2387_v51 }
  0x8e   :  { %v104_v6 = vpop.f32.mrf.mxu0 }
  0x8f   :  { %v2680_v7 = vadd.f32 %v110_v5, %v104_v6 }
  0x91   :  { %v116_v8 = vsel %vm115_vm2, %v2680_v7, 0.0  ;;  %v131_v9 = vmul.f32 %v2680_v7, %v2680_v7 }
  0x92   :  { %117 = vadd.xlane.f32.xlu0 %v116_v8 }
  0x93   :  { %v133_v10 = vsel %vm115_vm2, %v131_v9, 0.0 }
  0x94   :  { %134 = vadd.xlane.f32.xlu1 %v133_v10 }
  0x96   :  { %v107_v11 = vpop.f32.mrf.mxu0 }
  0x97   :  { %v2687_v12 = vadd.f32 %v110_v5, %v107_v11 }
  0x99   :  { %v119_v13 = vsel %vm115_vm2, %v2687_v12, 0.0  ;;  %v132_v14 = vmul.f32 %v2687_v12, %v2687_v12 }
  0x9a   :  { %120 = vadd.xlane.f32.xlu0 %v119_v13 }
  0x9b   :  { %v136_v15 = vsel %vm115_vm2, %v132_v14, 0.0 }
  0x9c   :  { %137 = vadd.xlane.f32.xlu1 %v136_v15 }
 0x105   :  { %v118_v23 = vpop.xlane.xlu0 %117 }
 0x106   :  { %v129_v24 = vmul.f32 %v2694_v22, %v118_v23 }
 0x107   :  { %v135_v25 = vpop.xlane.xlu1 %134 }
 0x108   :  { %v141_v26 = vmul.f32 %v129_v24, %v129_v24  ;;  %v139_v27 = vmul.f32 %v135_v25, %v2694_v22  ;;  %v145_v57 = vsub.f32 %v2680_v7, %v129_v24 }
 0x10a   :  { %v143_v28 = vsub.f32 %v139_v27, %v141_v26 }
 0x10c   :  { %v147_v32 = vadd.f32 1e-05, %v143_v28 }
 0x10d   :  { %v121_v34 = vpop.xlane.xlu0 %120 }
 0x10e   :  { %2463 = vrsqrt.f32 %v147_v32  ;;  %v130_v35 = vmul.f32 %v2694_v22, %v121_v34  ;;  %vm155_vm5 = vweird.f32 %v147_v32 }
 0x10f   :  { %v138_v36 = vpop.xlane.xlu1 %137 }
 0x110   :  { %v142_v40 = vmul.f32 %v130_v35, %v130_v35  ;;  %v140_v41 = vmul.f32 %v138_v36, %v2694_v22  ;;  %v146_v3 = vsub.f32 %v2687_v12, %v130_v35 }
 0x112   :  { %v144_v43 = vsub.f32 %v140_v41, %v142_v40 }
 0x114   :  { %v2464_v44 = vpop.eup %2463  ;;  %v148_v45 = vadd.f32 1e-05, %v144_v43 }
 0x115   :  { %v150_v46 = vmul.f32 %v2464_v44, %v147_v32  ;;  %vm156_vm4 = vweird.f32 %v2464_v44 }
 0x116   :  { %2465 = vrsqrt.f32 %v148_v45  ;;  %vm157_vm6 = vmor %vm155_vm5, %vm156_vm4  ;;  %vm165_vm8 = vweird.f32 %v148_v45 }
 0x117   :  { %v151_v49 = vmul.f32 %v2464_v44, %v150_v46 }
 0x119   :  { %v152_v52 = vmul.f32 0.5, %v151_v49 }
 0x11b   :  { %v153_v53 = vsub.f32 1.5, %v152_v52 }
 0x11c   :  { %v2466_v54 = vpop.eup %2465 }
 0x11d   :  { %v154_v55 = vmul.f32 %v2464_v44, %v153_v53  ;;  %v160_v56 = vmul.f32 %v2466_v54, %v148_v45  ;;  %vm166_vm7 = vweird.f32 %v2466_v54 }
 0x11e   :  { %vm167_vm9 = vmor %vm165_vm8, %vm166_vm7 }
 0x11f   :  { %v158_v58 = vsel %vm157_vm6, %v2464_v44, %v154_v55  ;;  %v161_v59 = vmul.f32 %v2466_v54, %v160_v56 }
 0x120   :  { %v169_v61 = vmul.f32 %v158_v58, %v145_v57 }
 0x121   :  { %v162_v62 = vmul.f32 0.5, %v161_v59 }
 0x122   :  { %v174_v1 = vmul.f32 %v2446_v60, %v169_v61 }
 0x123   :  { %v163_v63 = vsub.f32 1.5, %v162_v62 }
 0x124   :  { %v179_v5 = vadd.f32 %v2447_v0, %v174_v1 }
 0x125   :  { %v164_v2 = vmul.f32 %v2466_v54, %v163_v63 }
 0x126   :  { %v181_v9 = vpack.c.bf16 %v179_v5, %v179_v5 }
 0x127   :  { %v168_v4 = vsel %vm167_vm9, %v2466_v54, %v164_v2 }
 0x128   :  { %v170_v6 = vmul.f32 %v168_v4, %v146_v3  ;;  %v193_v13 = vunpack.c.l.b16 %v181_v9 }
 0x12a   :  { %v175_v8 = vmul.f32 %v2446_v60, %v170_v6 }
 0x12c   :  { %v180_v10 = vadd.f32 %v2447_v0, %v175_v8 }
 0x12e   :  { %v182_v11 = vpack.c.bf16 %v180_v10, %v180_v10 }
 0x130   :  { %v194_v14 = vunpack.c.l.b16 %v182_v11 }
 0x132   :  { %v195_v15 = vpack.c.b16 %v194_v14, %v193_v13 }
 0x134   :  { %2020 = vmatmul.msk.bf16.vlgmr.msra.gmra.mxu1 %vm115_vm2, %v195_v15  ;;  %2029 = vmatmul.msk.bf16.vlgmr.msra.gmra.mxu2 %vm115_vm2, %v195_v15 }
 0x135   :  { %2038 = vmatmul.msk.bf16.vlgmr.msra.gmra.mxu3 %vm115_vm2, %v195_v15  ;;  %2047 = vmatmul.msk.bf16.vlgmr.msrb.gmra.mxu0 %vm115_vm2, %v195_v15 }
 0x144   :  { %2056 = vmatmul.msk.bf16.vlgmr.msrb.gmra.mxu1 %vm115_vm2, %v195_v15  ;;  %2065 = vmatmul.msk.bf16.vlgmr.msrb.gmra.mxu2 %vm115_vm2, %v195_v15 }
 0x1b1   :  { %v220_v16 = vpop.f32.mrf.mxu1 }
 0x1b2   :  { %v306_v17 = vpop.f32.mrf.mxu0  ;;  %v371_v32 = vpack.c.bf16 %v220_v16, %v220_v16 }
 0x1b3   :  { %v377_v18 = vpack.c.bf16 %v306_v17, %v306_v17 }
 0x1b5   :  { %v426_v19 = vsel %vm383_vm10, %v377_v18, 0 }
 0x1b6   :  { %435 = vmatpush.bf16.xpose.msra.mxu1 %v426_v19  ;;  %v2392_v19 = vld [vmem:[%s3135_s8 + $0x18] sm:$0xff] }
 0x1b7   :  { %v246_v20 = vpop.f32.mrf.mxu2 }
 0x1b8   :  { %v280_v21 = vpop.f32.mrf.mxu3  ;;  %v373_v26 = vpack.c.bf16 %v246_v20, %v246_v20  ;;  %v2396_v20 = vld [vmem:[%s3135_s8 + $0x38] sm:$0xff] }
 0x1b9   :  { %v375_v23 = vpack.c.bf16 %v280_v21, %v280_v21  ;;  %v222_v24 = vpop.f32.mrf.mxu1  ;;  %v2391_v21 = vld [vmem:[%s3135_s8 + $0x10] sm:$0xff] }
 0x1ba   :  { %v308_v25 = vpop.f32.mrf.mxu0  ;;  %v372_v41 = vpack.c.bf16 %v222_v24, %v222_v24 }
 0x1bb   :  { %v378_v27 = vpack.c.bf16 %v308_v25, %v308_v25  ;;  %v388_v28 = vsel %vm383_vm10, %v375_v23, 0  ;;  %v2395_v23 = vld [vmem:[%s3135_s8 + $0x30] sm:$0xff] }
 0x1bc   :  { %397 = vmatpush.bf16.xpose.msrb.mxu3 %v388_v28 }
 0x1bd   :  { %v445_v29 = vsel %vm383_vm10, %v378_v27, 0  ;;  %2068 = vmatmul.msk.bf16.vlgmr.msra.gmra.mxu1 %vm383_vm10, %v373_v26 }
 0x1be   :  { %454 = vmatpush.bf16.xpose.msra.mxu2 %v445_v29 }
 0x1bf   :  { %v248_v30 = vpop.f32.mrf.mxu2 }
 0x1c0   :  { %v282_v31 = vpop.f32.mrf.mxu3  ;;  %v374_v36 = vpack.c.bf16 %v248_v30, %v248_v30 }
 0x1c1   :  { %v376_v33 = vpack.c.bf16 %v282_v31, %v282_v31  ;;  %v340_v34 = vpop.f32.mrf.mxu1 }
 0x1c2   :  { %v379_v35 = vpack.c.bf16 %v340_v34, %v340_v34 }
 0x1c3   :  { %v407_v37 = vsel %vm383_vm10, %v376_v33, 0  ;;  %2066 = vmatmul.msk.bf16.vlgmr.msrb.gmra.mxu3 %vm383_vm10, %v371_v32 }
 0x1c4   :  { %v514_v38 = vsel %vm512_vm11, %v379_v35, 0  ;;  %416 = vmatpush.bf16.xpose.msra.mxu0 %v407_v37 }
 0x1c5   :  { %2069 = vmatmul.msk.bf16.vlgmr.msra.gmra.mxu2 %vm383_vm10, %v374_v36  ;;  %523 = vmatpush.bf16.msra.mxu3 %v514_v38 }
 0x1c7   :  { %v366_v39 = vpop.f32.mrf.mxu2 }
 0x1c8   :  { %v381_v40 = vpack.c.bf16 %v366_v39, %v366_v39 }
 0x1c9   :  { %v342_v42 = vpop.f32.mrf.mxu1  ;;  %642 = vmatpush.bf16.msrb.mxu3 %v2392_v19 }
 0x1ca   :  { %v552_v43 = vsel %vm512_vm11, %v381_v40, 0  ;;  %v380_v44 = vpack.c.bf16 %v342_v42, %v342_v42  ;;  %v2390_v40 = vld [vmem:[%s3135_s8 + $0x8] sm:$0xff]  ;;  %v2389_v42 = vld [vmem:[%s3135_s8] sm:$0xff] }
 0x1cb   :  { %2067 = vmatmul.msk.bf16.vlgmr.msra.gmra.mxu0 %vm383_vm10, %v372_v41  ;;  %561 = vmatpush.bf16.msrb.mxu1 %v552_v43  ;;  %v2394_v41 = vld [vmem:[%s3135_s8 + $0x28] sm:$0xff]  ;;  %v2393_v43 = vld [vmem:[%s3135_s8 + $0x20] sm:$0xff] }
 0x1cc   :  { %v533_v45 = vsel %vm512_vm11, %v380_v44, 0 }
 0x1cd   :  { %542 = vmatpush.bf16.msrb.mxu0 %v533_v45  ;;  %643 = vmatpush.bf16.msrb.mxu3 %v2391_v21 }
 0x1cf   :  { %v368_v46 = vpop.f32.mrf.mxu2 }
 0x1d0   :  { %v382_v47 = vpack.c.bf16 %v368_v46, %v368_v46 }
 0x1d1   :  { %688 = vmatpush.bf16.msra.mxu0 %v2396_v20  ;;  %644 = vmatpush.bf16.msrb.mxu3 %v2390_v40 }
 0x1d2   :  { %v571_v48 = vsel %vm512_vm11, %v382_v47, 0 }
 0x1d3   :  { %580 = vmatpush.bf16.msrb.mxu2 %v571_v48 }
 0x1d5   :  { %689 = vmatpush.bf16.msra.mxu0 %v2395_v23  ;;  %645 = vmatpush.bf16.msrb.mxu3 %v2389_v42 }
 0x1d9   :  { %690 = vmatpush.bf16.msra.mxu0 %v2394_v41 }
 0x1dd   :  { %691 = vmatpush.bf16.msra.mxu0 %v2393_v43 }
 0x23a   :  { %v437_v49 = vpop.f32.mrf.mxu1 }
 0x23b   :  { %v467_v50 = vsel %vm460_vm12, %v437_v49, -inf }
 0x23c   :  { %468 = vmax.xlane.f32.xlu1 %v467_v50 }
 0x242   :  { %v439_v51 = vpop.f32.mrf.mxu1 }
 0x246   :  { %v399_v52 = vpop.f32.mrf.mxu3 }
 0x247   :  { %v461_v53 = vsel %vm460_vm12, %v399_v52, -inf }
 0x248   :  { %v456_v54 = vpop.f32.mrf.mxu2  ;;  %462 = vmax.xlane.f32.xlu2 %v461_v53  ;;  %v418_v55 = vpop.f32.mrf.mxu0 }
 0x249   :  { %v470_v56 = vsel %vm460_vm12, %v456_v54, -inf  ;;  %v464_v58 = vsel %vm460_vm12, %v418_v55, -inf }
 0x24a   :  { %471 = vmax.xlane.f32.xlu0 %v470_v56 }
 0x24e   :  { %v401_v57 = vpop.f32.mrf.mxu3 }
 0x250   :  { %v458_v59 = vpop.f32.mrf.mxu2  ;;  %465 = vmax.xlane.f32.xlu2 %v464_v58  ;;  %v420_v60 = vpop.f32.mrf.mxu0 }
 0x2af   :  { %v469_v61 = vpop.xlane.xlu1 %468 }
 0x2b0   :  { %v475_v1 = vsub.f32 %v437_v49, %v469_v61 }
 0x2b2   :  { %v481_v5 = vmul.f32 1.442695, %v475_v1 }
 0x2bb   :  { %v463_v62 = vpop.xlane.xlu2 %462 }
 0x2bc   :  { %v473_v63 = vsub.f32 %v399_v52, %v463_v62 }
 0x2bd   :  { %v472_v0 = vpop.xlane.xlu0 %471 }
 0x2be   :  { %v477_v2 = vmul.f32 1.442695, %v473_v63  ;;  %v476_v3 = vsub.f32 %v456_v54, %v472_v0 }
 0x2c0   :  { %2467 = vpow2.f32 %v477_v2  ;;  %v483_v4 = vmul.f32 1.442695, %v476_v3  ;;  %v2448_v3 = vld [vmem:[%s3136_s9] ss:$0 sm:$0xff] }
 0x2c2   :  { %2469 = vpow2.f32 %v483_v4 }
 0x2c3   :  { %v466_v6 = vpop.xlane.xlu2 %465  ;;  %2471 = vpow2.f32 %v481_v5 }
 0x2c4   :  { %v474_v8 = vsub.f32 %v418_v55, %v466_v6 }
 0x2c6   :  { %v2468_v9 = vpop.eup %2467  ;;  %v479_v10 = vmul.f32 1.442695, %v474_v8 }
 0x2c7   :  { %v485_v11 = vsel %vm460_vm12, %v2468_v9, 0.0 }
 0x2c8   :  { %v2470_v13 = vpop.eup %2469  ;;  %2473 = vpow2.f32 %v479_v10  ;;  %486 = vadd.xlane.f32.xlu2 %v485_v11 }
 0x2c9   :  { %v494_v14 = vsel %vm460_vm12, %v2470_v13, 0.0  ;;  %v2472_v15 = vpop.eup %2471 }
 0x2ca   :  { %495 = vadd.xlane.f32.xlu1 %v494_v14  ;;  %v491_v18 = vsel %vm460_vm12, %v2472_v15, 0.0 }
 0x2ce   :  { %v2474_v16 = vpop.eup %2473 }
 0x2cf   :  { %v488_v17 = vsel %vm460_vm12, %v2474_v16, 0.0 }
 0x2d0   :  { %489 = vadd.xlane.f32.xlu0 %v488_v17  ;;  %492 = vadd.xlane.f32.xlu2 %v491_v18 }
 0x33b   :  { %v487_v24 = vpop.xlane.xlu2 %486 }
 0x33c   :  { %2475 = vrcp.f32 %v487_v24 }
 0x33d   :  { %v496_v25 = vpop.xlane.xlu1 %495 }
 0x33e   :  { %2477 = vrcp.f32 %v496_v25 }
 0x342   :  { %v2476_v26 = vpop.eup %2475 }
 0x343   :  { %v501_v27 = vmul.f32 %v2476_v26, %v2468_v9  ;;  %v490_v28 = vpop.xlane.xlu0 %489  ;;  %v493_v29 = vpop.xlane.xlu2 %492 }
 0x344   :  { %v2478_v30 = vpop.eup %2477  ;;  %2479 = vrcp.f32 %v490_v28 }
 0x345   :  { %v505_v31 = vpack.c.bf16 %v501_v27, %v501_v27  ;;  %v504_v32 = vmul.f32 %v2478_v30, %v2470_v13  ;;  %2481 = vrcp.f32 %v493_v29  ;;  %v2397_v27 = vld [vmem:[%s3139_s12] sm:$0xff] }
 0x347   :  { %v508_v33 = vpack.c.bf16 %v504_v32, %v504_v32  ;;  %2070 = vmatmul.msk.bf16.vlgmr.msra.gmra.mxu3 %vm460_vm12, %v505_v31 }
 0x349   :  { %2073 = vmatmul.msk.bf16.vlgmr.msrb.gmra.mxu2 %vm460_vm12, %v508_v33 }
 0x34a   :  { %v2480_v34 = vpop.eup %2479 }
 0x34b   :  { %v2482_v35 = vpop.eup %2481  ;;  %v502_v36 = vmul.f32 %v2480_v34, %v2474_v16 }
 0x34c   :  { %v503_v37 = vmul.f32 %v2482_v35, %v2472_v15 }
 0x34d   :  { %v506_v38 = vpack.c.bf16 %v502_v36, %v502_v36 }
 0x34e   :  { %v507_v39 = vpack.c.bf16 %v503_v37, %v503_v37 }
 0x34f   :  { %2071 = vmatmul.msk.bf16.vlgmr.msrb.gmra.mxu0 %vm460_vm12, %v506_v38 }
 0x350   :  { %2072 = vmatmul.msk.bf16.vlgmr.msrb.gmra.mxu1 %vm460_vm12, %v507_v39 }
 0x3ca   :  { %v525_v44 = vpop.f32.mrf.mxu3 }
 0x3cb   :  { %v586_v45 = vpack.c.bf16 %v525_v44, %v525_v44 }
 0x3cc   :  { %v544_v46 = vpop.f32.mrf.mxu0  ;;  %v582_v47 = vpop.f32.mrf.mxu2 }
 0x3cd   :  { %v587_v48 = vpack.c.bf16 %v544_v46, %v544_v46  ;;  %v563_v49 = vpop.f32.mrf.mxu1  ;;  %v589_v50 = vpack.c.bf16 %v582_v47, %v582_v47  ;;  %v608_v52 = vunpack.c.l.b16 %v586_v45 }
 0x3ce   :  { %v588_v51 = vpack.c.bf16 %v563_v49, %v563_v49  ;;  %v2449_v49 = vld [vmem:[%s3137_s10] ss:$0 sm:$0xff] }
 0x3cf   :  { %v609_v53 = vunpack.c.l.b16 %v587_v48  ;;  %v655_v54 = vunpack.c.l.b16 %v589_v50 }
 0x3d0   :  { %v654_v55 = vunpack.c.l.b16 %v588_v51 }
 0x3d1   :  { %v610_v56 = vpack.c.b16 %v609_v53, %v608_v52 }
 0x3d2   :  { %v656_v57 = vpack.c.b16 %v655_v54, %v654_v55  ;;  %v527_v58 = vpop.f32.mrf.mxu3 }
 0x3d3   :  { %2090 = vmatmul.msk.bf16.vlgmr.msrb.gmra.mxu3 %vm383_vm10, %v610_v56  ;;  %v2450_v56 = vld [vmem:[%s3138_s11] ss:$0 sm:$0xff] }
 0x3d4   :  { %2107 = vmatmul.msk.bf16.vlgmr.msra.gmra.mxu0 %vm383_vm10, %v656_v57  ;;  %v546_v59 = vpop.f32.mrf.mxu0  ;;  %v584_v60 = vpop.f32.mrf.mxu2 }
 0x3d5   :  { %v565_v61 = vpop.f32.mrf.mxu1 }
 0x3d6   :  { %v2451_v61 = vld [vmem:[%s3140_s13] ss:$0 sm:$0xff] }
 0x451   :  { %v693_v62 = vpop.f32.mrf.mxu0 }
 0x452   :  { %v699_v0 = vsel %vm115_vm2, %v693_v62, 0.0 }
 0x456   :  { %v647_v63 = vpop.f32.mrf.mxu3 }
 0x457   :  { %v698_v1 = vsel %vm115_vm2, %v647_v63, 0.0 }
 0x458   :  { %v700_v2 = vadd.f32 %v699_v0, %v698_v1  ;;  %v2406_v0 = vld [vmem:[%s3141_s14 + $0x38] sm:$0xff] }
 0x459   :  { %v695_v6 = vpop.f32.mrf.mxu0  ;;  %963 = vmatpush.bf16.msra.mxu2 %v2406_v0 }
 0x45a   :  { %v704_v4 = vadd.f32 %v700_v2, %v2680_v7  ;;  %v702_v11 = vsel %vm115_vm2, %v695_v6, 0.0 }
 0x45c   :  { %v2806_v5 = vadd.f32 %v2448_v3, %v704_v4 }
 0x45e   :  { %v649_v8 = vpop.f32.mrf.mxu3  ;;  %v714_v9 = vsel %vm115_vm2, %v2806_v5, 0.0  ;;  %v722_v10 = vmul.f32 %v2806_v5, %v2806_v5 }
 0x45f   :  { %v701_v13 = vsel %vm115_vm2, %v649_v8, 0.0  ;;  %715 = vadd.xlane.f32.xlu0 %v714_v9 }
 0x460   :  { %v703_v14 = vadd.f32 %v702_v11, %v701_v13  ;;  %v724_v15 = vsel %vm115_vm2, %v722_v10, 0.0  ;;  %v2404_v11 = vld [vmem:[%s3141_s14 + $0x28] sm:$0xff] }
 0x461   :  { %725 = vadd.xlane.f32.xlu2 %v724_v15 }
 0x462   :  { %v705_v7 = vadd.f32 %v703_v14, %v2687_v12  ;;  %v2398_v12 = vld [vmem:[%s3139_s12 + $0x8] sm:$0xff] }
 0x463   :  { %802 = vmatpush.bf16.msra.mxu1 %v2398_v12 }
 0x464   :  { %v2816_v16 = vadd.f32 %v2448_v3, %v705_v7  ;;  %v2405_v3 = vld [vmem:[%s3141_s14 + $0x30] sm:$0xff] }
 0x465   :  { %964 = vmatpush.bf16.msra.mxu2 %v2405_v3 }
 0x466   :  { %v717_v17 = vsel %vm115_vm2, %v2816_v16, 0.0  ;;  %v723_v18 = vmul.f32 %v2816_v16, %v2816_v16 }
 0x467   :  { %718 = vadd.xlane.f32.xlu1 %v717_v17  ;;  %803 = vmatpush.bf16.msra.mxu1 %v2397_v27  ;;  %v2403_v17 = vld [vmem:[%s3141_s14 + $0x20] sm:$0xff] }
 0x468   :  { %v727_v19 = vsel %vm115_vm2, %v723_v18, 0.0 }
 0x469   :  { %728 = vadd.xlane.f32.xlu0 %v727_v19  ;;  %965 = vmatpush.bf16.msra.mxu2 %v2404_v11 }
 0x46d   :  { %966 = vmatpush.bf16.msra.mxu2 %v2403_v17 }
 0x4d2   :  { %v716_v20 = vpop.xlane.xlu0 %715 }
 0x4d3   :  { %v720_v21 = vmul.f32 %v716_v20, %v2694_v22 }
 0x4d4   :  { %v726_v23 = vpop.xlane.xlu2 %725 }
 0x4d5   :  { %v732_v24 = vmul.f32 %v720_v21, %v720_v21  ;;  %v730_v25 = vmul.f32 %v726_v23, %v2694_v22  ;;  %v736_v47 = vsub.f32 %v2806_v5, %v720_v21 }
 0x4d7   :  { %v734_v26 = vsub.f32 %v730_v25, %v732_v24  ;;  %v2402_v24 = vld [vmem:[%s3141_s14 + $0x18] sm:$0xff] }
 0x4d8   :  { %967 = vmatpush.bf16.msra.mxu2 %v2402_v24 }
 0x4d9   :  { %v738_v28 = vadd.f32 1e-05, %v734_v26 }
 0x4da   :  { %v719_v29 = vpop.xlane.xlu1 %718 }
 0x4db   :  { %2483 = vrsqrt.f32 %v738_v28  ;;  %v721_v30 = vmul.f32 %v719_v29, %v2694_v22  ;;  %vm746_vm14 = vweird.f32 %v738_v28 }
 0x4dc   :  { %v729_v31 = vpop.xlane.xlu0 %728 }
 0x4dd   :  { %v733_v32 = vmul.f32 %v721_v30, %v721_v30  ;;  %v731_v33 = vmul.f32 %v729_v31, %v2694_v22  ;;  %v737_v52 = vsub.f32 %v2816_v16, %v721_v30  ;;  %v2401_v31 = vld [vmem:[%s3141_s14 + $0x10] sm:$0xff] }
 0x4de   :  { %968 = vmatpush.bf16.msra.mxu2 %v2401_v31 }
 0x4df   :  { %v735_v34 = vsub.f32 %v731_v33, %v733_v32 }
 0x4e1   :  { %v2484_v35 = vpop.eup %2483  ;;  %v739_v36 = vadd.f32 1e-05, %v735_v34 }
 0x4e2   :  { %v741_v37 = vmul.f32 %v2484_v35, %v738_v28  ;;  %vm747_vm13 = vweird.f32 %v2484_v35 }
 0x4e3   :  { %2485 = vrsqrt.f32 %v739_v36  ;;  %vm748_vm15 = vmor %vm746_vm14, %vm747_vm13  ;;  %vm756_vm1 = vweird.f32 %v739_v36 }
 0x4e4   :  { %v742_v38 = vmul.f32 %v2484_v35, %v741_v37 }
 0x4e6   :  { %v743_v39 = vmul.f32 0.5, %v742_v38 }
 0x4e8   :  { %v744_v40 = vsub.f32 1.5, %v743_v39  ;;  %v2400_v39 = vld [vmem:[%s3141_s14 + $0x8] sm:$0xff] }
 0x4e9   :  { %v2486_v41 = vpop.eup %2485  ;;  %969 = vmatpush.bf16.msra.mxu2 %v2400_v39 }
 0x4ea   :  { %v745_v42 = vmul.f32 %v2484_v35, %v744_v40  ;;  %v751_v43 = vmul.f32 %v2486_v41, %v739_v36  ;;  %vm757_vm0 = vweird.f32 %v2486_v41 }
 0x4eb   :  { %vm758_vm3 = vmor %vm756_vm1, %vm757_vm0 }
 0x4ec   :  { %v752_v44 = vmul.f32 %v2486_v41, %v751_v43  ;;  %v749_v45 = vsel %vm748_vm15, %v2484_v35, %v745_v42 }
 0x4ed   :  { %v760_v50 = vmul.f32 %v749_v45, %v736_v47  ;;  %v2399_v45 = vld [vmem:[%s3141_s14] sm:$0xff] }
 0x4ee   :  { %v753_v46 = vmul.f32 0.5, %v752_v44  ;;  %970 = vmatpush.bf16.msra.mxu2 %v2399_v45 }
 0x4ef   :  { %v765_v54 = vmul.f32 %v2449_v49, %v760_v50 }
 0x4f0   :  { %v754_v48 = vsub.f32 1.5, %v753_v46 }
 0x4f1   :  { %v770_v58 = vadd.f32 %v2450_v56, %v765_v54 }
 0x4f2   :  { %v755_v51 = vmul.f32 %v2486_v41, %v754_v48 }
 0x4f4   :  { %v759_v53 = vsel %vm758_vm3, %v2486_v41, %v755_v51 }
 0x4f5   :  { %v761_v55 = vmul.f32 %v759_v53, %v737_v52 }
 0x4f7   :  { %v766_v57 = vmul.f32 %v2449_v49, %v761_v55 }
 0x4f9   :  { %v771_v59 = vadd.f32 %v2450_v56, %v766_v57 }
 0x4fb   :  { %v772_v60 = vpack.c.bf16 %v771_v59, %v770_v58 }
 0x4fd   :  { %2116 = vmatmul.msk.bf16.vlgmr.msra.gmra.mxu1 %vm115_vm2, %v772_v60 }
 0x57a   :  { %v805_v62 = vpop.f32.mrf.mxu1 }
 0x57b   :  { %v2845_v63 = vadd.f32 %v2451_v61, %v805_v62 }
 0x57d   :  { %v2851_v1 = vmul.f32 0.70710677, %v2845_v63 }
 0x57f   :  { %v814_v2 = vmul.f32 %v2851_v1, %v2851_v1 }
 0x581   :  { %v815_v4 = vmin.f32 %v814_v2, 16.0 }
 0x582   :  { %v807_v6 = vpop.f32.mrf.mxu1 }
 0x583   :  { %v816_v8 = vmul.f32 2.1237322e-06, %v815_v4  ;;  %v827_v9 = vmul.f32 3.8918573e-05, %v815_v4  ;;  %v2858_v10 = vadd.f32 %v2451_v61, %v807_v6 }
 0x585   :  { %v817_v13 = vadd.f32 0.00028619796, %v816_v8  ;;  %v828_v14 = vadd.f32 0.001143296, %v827_v9  ;;  %v2864_v15 = vmul.f32 0.70710677, %v2858_v10 }
 0x587   :  { %v829_v7 = vmul.f32 %v828_v14, %v815_v4  ;;  %v854_v18 = vmul.f32 %v2864_v15, %v2864_v15  ;;  %v818_v19 = vmul.f32 %v817_v13, %v815_v4 }
 0x589   :  { %v830_v20 = vadd.f32 0.014752088, %v829_v7  ;;  %v855_v21 = vmin.f32 %v854_v18, 16.0  ;;  %v819_v26 = vadd.f32 0.0036580483, %v818_v19 }
 0x58b   :  { %v831_v23 = vmul.f32 %v830_v20, %v815_v4  ;;  %v856_v25 = vmul.f32 2.1237322e-06, %v855_v21  ;;  %v867_v12 = vmul.f32 3.8918573e-05, %v855_v21  ;;  %v820_v34 = vmul.f32 %v819_v26, %v815_v4 }
 0x58d   :  { %v832_v27 = vadd.f32 0.112945676, %v831_v23  ;;  %v857_v28 = vadd.f32 0.00028619796, %v856_v25  ;;  %v868_v29 = vadd.f32 0.001143296, %v867_v12 }
 0x58e   :  { %v821_v41 = vadd.f32 0.05243302, %v820_v34  ;;  %v2452_v34 = vld [vmem:[%s3142_s15] ss:$0 sm:$0xff] }
 0x58f   :  { %v833_v30 = vmul.f32 %v832_v27, %v815_v4  ;;  %v858_v32 = vmul.f32 %v857_v28, %v855_v21  ;;  %v869_v33 = vmul.f32 %v868_v29, %v855_v21  ;;  %v810_v28 = vmul.f32 0.5, %v2845_v63 }
 0x590   :  { %v822_v47 = vmul.f32 %v821_v41, %v815_v4  ;;  %v811_v29 = vmul.f32 0.5, %v2858_v10 }
 0x591   :  { %v834_v35 = vadd.f32 0.4994258, %v833_v30  ;;  %v859_v36 = vadd.f32 0.0036580483, %v858_v32  ;;  %v870_v37 = vadd.f32 0.014752088, %v869_v33 }
 0x592   :  { %v823_v52 = vadd.f32 0.18741608, %v822_v47 }
 0x593   :  { %v835_v38 = vmul.f32 %v834_v35, %v815_v4  ;;  %v871_v40 = vmul.f32 %v870_v37, %v855_v21  ;;  %v860_v43 = vmul.f32 %v859_v36, %v855_v21 }
 0x594   :  { %v824_v57 = vmul.f32 %v823_v52, %v815_v4 }
 0x595   :  { %v836_v42 = vadd.f32 1.0, %v835_v38  ;;  %v872_v44 = vadd.f32 0.112945676, %v871_v40  ;;  %v861_v48 = vadd.f32 0.05243302, %v860_v43 }
 0x596   :  { %v825_v0 = vadd.f32 1.1283791, %v824_v57  ;;  %v2407_v57 = vld [vmem:[%s3163_s25 + $0x20] sm:$0xff] }
 0x597   :  { %2487 = vrcp.f32 %v836_v42  ;;  %v873_v46 = vmul.f32 %v872_v44, %v855_v21  ;;  %v862_v54 = vmul.f32 %v861_v48, %v855_v21  ;;  %v848_v59 = vand.u32 2147483648, %v836_v42 }
 0x598   :  { %v846_v61 = vand.u32 2147483647, %v836_v42  ;;  %vm842_vm5 = vweird.f32 %v836_v42  ;;  %v826_v13 = vmul.f32 %v825_v0, %v2851_v1 }
 0x599   :  { %v874_v49 = vadd.f32 0.4994258, %v873_v46  ;;  %v863_v60 = vadd.f32 0.18741608, %v862_v54  ;;  %v849_v6 = vor.u32 1.1754944e-38, %v848_v59  ;;  %v2411_v59 = vld [vmem:[%s3133_s6 + $0x20] sm:$0xff] }
 0x59a   :  { %vm847_vm7 = vcmp.eq.f32.partialorder %v846_v61, 8.507059e+37 }
 0x59b   :  { %v875_v50 = vmul.f32 %v874_v49, %v855_v21  ;;  %v864_v8 = vmul.f32 %v863_v60, %v855_v21  ;;  %v2408_v49 = vld [vmem:[%s3163_s25 + $0x28] sm:$0xff] }
 0x59c   :  { %1084 = vmatpush.bf16.msra.mxu3 %v2408_v49 }
 0x59d   :  { %v2488_v51 = vpop.eup %2487  ;;  %v876_v55 = vadd.f32 1.0, %v875_v50  ;;  %v865_v4 = vadd.f32 1.1283791, %v864_v8  ;;  %v2410_v50 = vld [vmem:[%s3163_s25 + $0x38] sm:$0xff] }
 0x59e   :  { %v838_v53 = vmul.f32 %v2488_v51, %v836_v42  ;;  %vm843_vm4 = vweird.f32 %v2488_v51  ;;  %1110 = vmatpush.bf16.msrb.mxu0 %v2410_v50 }
 0x59f   :  { %2489 = vrcp.f32 %v876_v55  ;;  %vm844_vm6 = vmor %vm842_vm5, %vm843_vm4  ;;  %v888_v7 = vand.u32 2147483648, %v876_v55  ;;  %v886_v19 = vand.u32 2147483647, %v876_v55  ;;  %vm882_vm9 = vweird.f32 %v876_v55 }
 0x5a0   :  { %v839_v56 = vsub.f32 1.0, %v838_v53  ;;  %v866_v25 = vmul.f32 %v865_v4, %v2864_v15  ;;  %1085 = vmatpush.bf16.msra.mxu3 %v2407_v57 }
 0x5a1   :  { %v889_v23 = vor.u32 1.1754944e-38, %v888_v7  ;;  %vm887_vm14 = vcmp.eq.f32.partialorder %v886_v19, 8.507059e+37 }
 0x5a2   :  { %v840_v58 = vmul.f32 %v2488_v51, %v839_v56 }
 0x5a4   :  { %v841_v62 = vadd.f32 %v2488_v51, %v840_v58  ;;  %v2409_v58 = vld [vmem:[%s3163_s25 + $0x30] sm:$0xff] }
 0x5a5   :  { %v2490_v2 = vpop.eup %2489  ;;  %1111 = vmatpush.bf16.msrb.mxu0 %v2409_v58 }
 0x5a6   :  { %v845_v3 = vsel %vm844_vm6, %v2488_v51, %v841_v62  ;;  %v878_v9 = vmul.f32 %v2490_v2, %v876_v55  ;;  %vm883_vm8 = vweird.f32 %v2490_v2  ;;  %v2412_v51 = vld [vmem:[%s3133_s6 + $0x28] sm:$0xff] }
 0x5a7   :  { %v850_v11 = vsel %vm847_vm7, %v849_v6, %v845_v3  ;;  %vm884_vm13 = vmor %vm882_vm9, %vm883_vm8  ;;  %1145 = vmatpush.bf16.msrb.mxu1 %v2412_v51  ;;  %v2416_v3 = vld [vmem:[%s3134_s7 + $0x28] sm:$0xff]  ;;  %v2418_v6 = vld [vmem:[%s3134_s7 + $0x38] sm:$0xff] }
 0x5a8   :  { %v879_v14 = vsub.f32 1.0, %v878_v9  ;;  %v851_v17 = vmul.f32 %v850_v11, %v826_v13  ;;  %v2413_v9 = vld [vmem:[%s3133_s6 + $0x30] sm:$0xff]  ;;  %v2415_v11 = vld [vmem:[%s3134_s7 + $0x20] sm:$0xff] }
 0x5a9   :  { %1206 = vmatpush.bf16.msra.mxu0 %v2416_v3  ;;  %v2417_v13 = vld [vmem:[%s3134_s7 + $0x30] sm:$0xff] }
 0x5aa   :  { %v880_v18 = vmul.f32 %v2490_v2, %v879_v14  ;;  %v2117_v24 = vclamps-f32 %v851_v17, 1.0 }
 0x5ab   :  { %1146 = vmatpush.bf16.msrb.mxu1 %v2411_v59 }
 0x5ac   :  { %v881_v20 = vadd.f32 %v2490_v2, %v880_v18  ;;  %v894_v27 = vadd.f32 1.0, %v2117_v24  ;;  %v2453_v24 = vld [vmem:[%s3164_s5 + $0x1] ss:$0 sm:$0xff] }
 0x5ad   :  { %1207 = vmatpush.bf16.msra.mxu0 %v2415_v11 }
 0x5ae   :  { %v885_v21 = vsel %vm884_vm13, %v2490_v2, %v881_v20  ;;  %v896_v31 = vmul.f32 %v894_v27, %v810_v28  ;;  %v2414_v2 = vld [vmem:[%s3133_s6 + $0x38] sm:$0xff] }
 0x5af   :  { %v890_v12 = vsel %vm887_vm14, %v889_v23, %v885_v21  ;;  %1171 = vmatpush.bf16.msrb.mxu3 %v2414_v2  ;;  %1232 = vmatpush.bf16.msra.mxu1 %v2418_v6 }
 0x5b0   :  { %v891_v26 = vmul.f32 %v890_v12, %v866_v25 }
 0x5b2   :  { %v2118_v1 = vclamps-f32 %v891_v26, 1.0  ;;  %v2454_v26 = vld [vmem:[%s3165_s1 + $0x1] ss:$0 sm:$0xff] }
 0x5b3   :  { %1172 = vmatpush.bf16.msrb.mxu3 %v2413_v9  ;;  %1233 = vmatpush.bf16.msra.mxu1 %v2417_v13 }
 0x5b4   :  { %v895_v30 = vadd.f32 1.0, %v2118_v1 }
 0x5b6   :  { %v897_v32 = vmul.f32 %v895_v30, %v811_v29 }
 0x5b8   :  { %v898_v33 = vpack.c.bf16 %v897_v32, %v896_v31 }
 0x5ba   :  { %971 = vmatmul.bf16.vlgmr.msra.gmra.mxu2 %v898_v33 }
 0x63d   :  { %v972_v15 = vpop.f32.mrf.mxu2 }
 0x63e   :  { %v977_v35 = vadd.f32 %v972_v15, %v2806_v5 }
 0x640   :  { %v2891_v36 = vadd.f32 %v2452_v34, %v977_v35 }
 0x642   :  { %v989_v37 = vsel %vm115_vm2, %v2891_v36, 0.0  ;;  %v997_v63 = vmul.f32 %v2891_v36, %v2891_v36 }
 0x643   :  { %990 = vadd.xlane.f32.xlu1 %v989_v37 }
 0x644   :  { %v999_v10 = vsel %vm115_vm2, %v997_v63, 0.0 }
 0x645   :  { %1000 = vadd.xlane.f32.xlu0 %v999_v10  ;;  %v974_v38 = vpop.f32.mrf.mxu2 }
 0x646   :  { %v978_v39 = vadd.f32 %v974_v38, %v2816_v16 }
 0x648   :  { %v2899_v40 = vadd.f32 %v2452_v34, %v978_v39 }
 0x64a   :  { %v992_v5 = vsel %vm115_vm2, %v2899_v40, 0.0  ;;  %v998_v41 = vmul.f32 %v2899_v40, %v2899_v40 }
 0x64b   :  { %993 = vadd.xlane.f32.xlu2 %v992_v5 }
 0x64c   :  { %v1002_v42 = vsel %vm115_vm2, %v998_v41, 0.0 }
 0x64d   :  { %1003 = vadd.xlane.f32.xlu1 %v1002_v42 }
 0x6b6   :  { %v991_v43 = vpop.xlane.xlu1 %990 }
 0x6b7   :  { %v995_v44 = vmul.f32 %v991_v43, %v2694_v22 }
 0x6b8   :  { %v1001_v45 = vpop.xlane.xlu0 %1000 }
 0x6b9   :  { %v1007_v46 = vmul.f32 %v995_v44, %v995_v44  ;;  %v1005_v47 = vmul.f32 %v1001_v45, %v2694_v22  ;;  %v1011_v19 = vsub.f32 %v2891_v36, %v995_v44 }
 0x6bb   :  { %v1009_v16 = vsub.f32 %v1005_v47, %v1007_v46 }
 0x6bd   :  { %v1013_v48 = vadd.f32 1e-05, %v1009_v16 }
 0x6be   :  { %v994_v52 = vpop.xlane.xlu2 %993 }
 0x6bf   :  { %2491 = vrsqrt.f32 %v1013_v48  ;;  %v996_v53 = vmul.f32 %v994_v52, %v2694_v22  ;;  %vm1021_vm0 = vweird.f32 %v1013_v48 }
 0x6c0   :  { %v1004_v54 = vpop.xlane.xlu1 %1003 }
 0x6c1   :  { %v1008_v55 = vmul.f32 %v996_v53, %v996_v53  ;;  %v1006_v56 = vmul.f32 %v1004_v54, %v2694_v22  ;;  %v1012_v28 = vsub.f32 %v2899_v40, %v996_v53 }
 0x6c3   :  { %v1010_v60 = vsub.f32 %v1006_v56, %v1008_v55 }
 0x6c5   :  { %v2492_v61 = vpop.eup %2491  ;;  %v1014_v62 = vadd.f32 1e-05, %v1010_v60 }
 0x6c6   :  { %v1016_v0 = vmul.f32 %v2492_v61, %v1013_v48  ;;  %vm1022_vm15 = vweird.f32 %v2492_v61 }
 0x6c7   :  { %2493 = vrsqrt.f32 %v1014_v62  ;;  %vm1023_vm1 = vmor %vm1021_vm0, %vm1022_vm15  ;;  %vm1031_vm4 = vweird.f32 %v1014_v62 }
 0x6c8   :  { %v1017_v8 = vmul.f32 %v2492_v61, %v1016_v0 }
 0x6ca   :  { %v1018_v14 = vmul.f32 0.5, %v1017_v8 }
 0x6cc   :  { %v1019_v4 = vsub.f32 1.5, %v1018_v14 }
 0x6cd   :  { %v2494_v7 = vpop.eup %2493 }
 0x6ce   :  { %v1020_v17 = vmul.f32 %v2492_v61, %v1019_v4  ;;  %v1026_v18 = vmul.f32 %v2494_v7, %v1014_v62  ;;  %vm1032_vm3 = vweird.f32 %v2494_v7 }
 0x6cf   :  { %vm1033_vm5 = vmor %vm1031_vm4, %vm1032_vm3 }
 0x6d0   :  { %v1024_v20 = vsel %vm1023_vm1, %v2492_v61, %v1020_v17  ;;  %v1027_v23 = vmul.f32 %v2494_v7, %v1026_v18 }
 0x6d1   :  { %v1035_v25 = vmul.f32 %v1024_v20, %v1011_v19 }
 0x6d2   :  { %v1028_v21 = vmul.f32 0.5, %v1027_v23 }
 0x6d3   :  { %v1040_v27 = vmul.f32 %v2453_v24, %v1035_v25 }
 0x6d4   :  { %v1029_v12 = vsub.f32 1.5, %v1028_v21 }
 0x6d5   :  { %v1045_v30 = vadd.f32 %v2454_v26, %v1040_v27 }
 0x6d6   :  { %v1030_v1 = vmul.f32 %v2494_v7, %v1029_v12 }
 0x6d7   :  { %v1047_v33 = vpack.c.bf16 %v1045_v30, %v1045_v30 }
 0x6d8   :  { %v1034_v29 = vsel %vm1033_vm5, %v2494_v7, %v1030_v1  ;;  %vm1875_vm5 = vcmask 1041409  }
 0x6d9   :  { %v1036_v31 = vmul.f32 %v1034_v29, %v1012_v28  ;;  %v1060_v35 = vunpack.c.l.b16 %v1047_v33 }
 0x6db   :  { %v1041_v32 = vmul.f32 %v2453_v24, %v1036_v31 }
 0x6dd   :  { %v1046_v34 = vadd.f32 %v2454_v26, %v1041_v32 }
 0x6df   :  { %v1048_v15 = vpack.c.bf16 %v1046_v34, %v1046_v34 }
 0x6e1   :  { %v1061_v37 = vunpack.c.l.b16 %v1048_v15 }
 0x6e3   :  { %v1062_v63 = vpack.c.b16 %v1061_v37, %v1060_v35 }
 0x6e5   :  { %2169 = vmatmul.msk.bf16.vlgmr.msra.gmra.mxu3 %vm115_vm2, %v1062_v63  ;;  %2178 = vmatmul.msk.bf16.vlgmr.msrb.gmra.mxu0 %vm115_vm2, %v1062_v63 }
 0x6e6   :  { %2195 = vmatmul.msk.bf16.vlgmr.msrb.gmra.mxu1 %vm115_vm2, %v1062_v63 }
 0x6f5   :  { %2204 = vmatmul.msk.bf16.vlgmr.msrb.gmra.mxu3 %vm115_vm2, %v1062_v63  ;;  %2221 = vmatmul.msk.bf16.vlgmr.msra.gmra.mxu0 %vm115_vm2, %v1062_v63 }
 0x6f6   :  { %2230 = vmatmul.msk.bf16.vlgmr.msra.gmra.mxu1 %vm115_vm2, %v1062_v63 }
 0x762   :  { %v1113_v10 = vpop.f32.mrf.mxu0 }
 0x763   :  { %v1148_v38 = vpop.f32.mrf.mxu1  ;;  %v1242_v0 = vpack.c.bf16 %v1113_v10, %v1113_v10 }
 0x764   :  { %v1244_v39 = vpack.c.bf16 %v1148_v38, %v1148_v38 }
 0x766   :  { %v1256_v5 = vsel %vm383_vm10, %v1244_v39, 0 }
 0x767   :  { %1265 = vmatpush.bf16.xpose.msrb.mxu2 %v1256_v5 }
 0x768   :  { %v1087_v41 = vpop.f32.mrf.mxu3 }
 0x769   :  { %v1240_v44 = vpack.c.bf16 %v1087_v41, %v1087_v41 }
 0x76a   :  { %v1115_v42 = vpop.f32.mrf.mxu0 }
 0x76b   :  { %v1150_v43 = vpop.f32.mrf.mxu1  ;;  %v1243_v8 = vpack.c.bf16 %v1115_v42, %v1115_v42 }
 0x76c   :  { %v1245_v45 = vpack.c.bf16 %v1150_v43, %v1150_v43 }
 0x76e   :  { %v1275_v46 = vsel %vm383_vm10, %v1245_v45, 0  ;;  %2231 = vmatmul.msk.bf16.vlgmr.msrb.gmra.mxu2 %vm383_vm10, %v1240_v44 }
 0x76f   :  { %1284 = vmatpush.bf16.xpose.msra.mxu3 %v1275_v46 }
 0x770   :  { %v1089_v47 = vpop.f32.mrf.mxu3 }
 0x771   :  { %v1241_v50 = vpack.c.bf16 %v1089_v47, %v1089_v47 }
 0x772   :  { %v1209_v16 = vpop.f32.mrf.mxu0 }
 0x773   :  { %v1248_v48 = vpack.c.bf16 %v1209_v16, %v1209_v16  ;;  %v1235_v49 = vpop.f32.mrf.mxu1 }
 0x774   :  { %v1250_v52 = vpack.c.bf16 %v1235_v49, %v1235_v49 }
 0x775   :  { %v1380_v51 = vsel %vm512_vm11, %v1248_v48, 0 }
 0x776   :  { %2232 = vmatmul.msk.bf16.vlgmr.msra.gmra.mxu3 %vm383_vm10, %v1241_v50  ;;  %1389 = vmatpush.bf16.msra.mxu2 %v1380_v51  ;;  %v1418_v58 = vsel %vm512_vm11, %v1250_v52, 0 }
 0x778   :  { %v1174_v53 = vpop.f32.mrf.mxu3 }
 0x779   :  { %v1246_v54 = vpack.c.bf16 %v1174_v53, %v1174_v53 }
 0x77a   :  { %v1211_v55 = vpop.f32.mrf.mxu0 }
 0x77b   :  { %v1294_v56 = vsel %vm383_vm10, %v1246_v54, 0  ;;  %v1249_v57 = vpack.c.bf16 %v1211_v55, %v1211_v55  ;;  %v1237_v60 = vpop.f32.mrf.mxu1  ;;  %v2422_v55 = vld [vmem:[%s3135_s8 + $0x58] sm:$0xff] }
 0x77c   :  { %1303 = vmatpush.bf16.xpose.msrb.mxu0 %v1294_v56  ;;  %v1251_v61 = vpack.c.bf16 %v1237_v60, %v1237_v60  ;;  %1509 = vmatpush.bf16.msrb.mxu2 %v2422_v55  ;;  %v2421_v56 = vld [vmem:[%s3135_s8 + $0x50] sm:$0xff] }
 0x77d   :  { %v1399_v59 = vsel %vm512_vm11, %v1249_v57, 0  ;;  %v2420_v57 = vld [vmem:[%s3135_s8 + $0x48] sm:$0xff]  ;;  %v2425_v60 = vld [vmem:[%s3135_s8 + $0x70] sm:$0xff] }
 0x77e   :  { %1408 = vmatpush.bf16.msrb.mxu3 %v1399_v59  ;;  %v1437_v6 = vsel %vm512_vm11, %v1251_v61, 0  ;;  %v2419_v59 = vld [vmem:[%s3135_s8 + $0x40] sm:$0xff]  ;;  %v2424_v61 = vld [vmem:[%s3135_s8 + $0x68] sm:$0xff] }
 0x780   :  { %v1176_v62 = vpop.f32.mrf.mxu3  ;;  %1510 = vmatpush.bf16.msrb.mxu2 %v2421_v56 }
 0x781   :  { %v1247_v2 = vpack.c.bf16 %v1176_v62, %v1176_v62  ;;  %v2423_v62 = vld [vmem:[%s3135_s8 + $0x60] sm:$0xff] }
 0x783   :  { %v1313_v3 = vsel %vm383_vm10, %v1247_v2, 0  ;;  %2233 = vmatmul.msk.bf16.vlgmr.msrb.gmra.mxu0 %vm383_vm10, %v1242_v0 }
 0x784   :  { %1427 = vmatpush.bf16.msra.mxu0 %v1418_v58  ;;  %1322 = vmatpush.bf16.xpose.msrb.mxu1 %v1313_v3  ;;  %v2426_v58 = vld [vmem:[%s3135_s8 + $0x78] sm:$0xff] }
 0x785   :  { %1511 = vmatpush.bf16.msrb.mxu2 %v2420_v57  ;;  %1555 = vmatpush.bf16.msra.mxu3 %v2426_v58 }
 0x789   :  { %1512 = vmatpush.bf16.msrb.mxu2 %v2419_v59  ;;  %1556 = vmatpush.bf16.msra.mxu3 %v2425_v60 }
 0x78b   :  { %2234 = vmatmul.msk.bf16.vlgmr.msrb.gmra.mxu1 %vm383_vm10, %v1243_v8 }
 0x78c   :  { %1446 = vmatpush.bf16.msra.mxu1 %v1437_v6 }
 0x78d   :  { %1557 = vmatpush.bf16.msra.mxu3 %v2424_v61 }
 0x791   :  { %1558 = vmatpush.bf16.msra.mxu3 %v2423_v62 }
 0x7f1   :  { %v1267_v9 = vpop.f32.mrf.mxu2 }
 0x7f2   :  { %v1328_v11 = vsel %vm460_vm12, %v1267_v9, -inf }
 0x7f3   :  { %1329 = vmax.xlane.f32.xlu2 %v1328_v11 }
 0x7f9   :  { %v1269_v13 = vpop.f32.mrf.mxu2  ;;  %v1286_v14 = vpop.f32.mrf.mxu3 }
 0x7fa   :  { %v1331_v4 = vsel %vm460_vm12, %v1286_v14, -inf }
 0x7fb   :  { %1332 = vmax.xlane.f32.xlu0 %v1331_v4 }
 0x800   :  { %v1305_v7 = vpop.f32.mrf.mxu0 }
 0x801   :  { %v1288_v17 = vpop.f32.mrf.mxu3  ;;  %v1334_v18 = vsel %vm460_vm12, %v1305_v7, -inf }
 0x802   :  { %1335 = vmax.xlane.f32.xlu1 %v1334_v18 }
 0x808   :  { %v1307_v19 = vpop.f32.mrf.mxu0  ;;  %v1324_v20 = vpop.f32.mrf.mxu1 }
 0x809   :  { %v1337_v23 = vsel %vm460_vm12, %v1324_v20, -inf }
 0x80a   :  { %1338 = vmax.xlane.f32.xlu2 %v1337_v23 }
 0x810   :  { %v1326_v24 = vpop.f32.mrf.mxu1 }
 0x866   :  { %v1330_v25 = vpop.xlane.xlu2 %1329 }
 0x867   :  { %v1340_v21 = vsub.f32 %v1267_v9, %v1330_v25 }
 0x869   :  { %v1344_v12 = vmul.f32 1.442695, %v1340_v21 }
 0x86b   :  { %2495 = vpow2.f32 %v1344_v12 }
 0x86e   :  { %v1333_v26 = vpop.xlane.xlu0 %1332 }
 0x86f   :  { %v1341_v27 = vsub.f32 %v1286_v14, %v1333_v26 }
 0x871   :  { %v2496_v1 = vpop.eup %2495  ;;  %v1346_v28 = vmul.f32 1.442695, %v1341_v27 }
 0x872   :  { %v1352_v29 = vsel %vm460_vm12, %v2496_v1, 0.0 }
 0x873   :  { %2497 = vpow2.f32 %v1346_v28  ;;  %1353 = vadd.xlane.f32.xlu0 %v1352_v29  ;;  %v2455_v28 = vld [vmem:[%s3136_s9 + $0x1] ss:$0 sm:$0xff] }
 0x875   :  { %v1336_v30 = vpop.xlane.xlu1 %1335 }
 0x876   :  { %v1342_v31 = vsub.f32 %v1305_v7, %v1336_v30 }
 0x878   :  { %v1348_v32 = vmul.f32 1.442695, %v1342_v31 }
 0x879   :  { %v2498_v33 = vpop.eup %2497 }
 0x87a   :  { %2499 = vpow2.f32 %v1348_v32  ;;  %v1355_v34 = vsel %vm460_vm12, %v2498_v33, 0.0 }
 0x87b   :  { %1356 = vadd.xlane.f32.xlu1 %v1355_v34 }
 0x87d   :  { %v1339_v15 = vpop.xlane.xlu2 %1338 }
 0x87e   :  { %v1343_v35 = vsub.f32 %v1324_v20, %v1339_v15 }
 0x880   :  { %v2500_v37 = vpop.eup %2499  ;;  %v1350_v63 = vmul.f32 1.442695, %v1343_v35 }
 0x881   :  { %v1358_v10 = vsel %vm460_vm12, %v2500_v37, 0.0 }
 0x882   :  { %2501 = vpow2.f32 %v1350_v63  ;;  %1359 = vadd.xlane.f32.xlu2 %v1358_v10 }
 0x888   :  { %v2502_v38 = vpop.eup %2501 }
 0x889   :  { %v1361_v39 = vsel %vm460_vm12, %v2502_v38, 0.0 }
 0x88a   :  { %1362 = vadd.xlane.f32.xlu0 %v1361_v39 }
 0x8e6   :  { %v1354_v5 = vpop.xlane.xlu0 %1353 }
 0x8e7   :  { %2503 = vrcp.f32 %v1354_v5 }
 0x8ed   :  { %v2504_v41 = vpop.eup %2503 }
 0x8ee   :  { %v1368_v42 = vmul.f32 %v2504_v41, %v2496_v1  ;;  %v1357_v43 = vpop.xlane.xlu1 %1356 }
 0x8ef   :  { %2505 = vrcp.f32 %v1357_v43 }
 0x8f0   :  { %v1372_v44 = vpack.c.bf16 %v1368_v42, %v1368_v42 }
 0x8f2   :  { %2235 = vmatmul.msk.bf16.vlgmr.msra.gmra.mxu2 %vm460_vm12, %v1372_v44 }
 0x8f5   :  { %v2506_v45 = vpop.eup %2505  ;;  %v1360_v46 = vpop.xlane.xlu2 %1359 }
 0x8f6   :  { %v1369_v47 = vmul.f32 %v2506_v45, %v2498_v33  ;;  %2507 = vrcp.f32 %v1360_v46 }
 0x8f8   :  { %v1373_v16 = vpack.c.bf16 %v1369_v47, %v1369_v47  ;;  %v2427_v47 = vld [vmem:[%s3139_s12 + $0x10] sm:$0xff] }
 0x8fa   :  { %2236 = vmatmul.msk.bf16.vlgmr.msrb.gmra.mxu3 %vm460_vm12, %v1373_v16 }
 0x8fc   :  { %v2508_v48 = vpop.eup %2507 }
 0x8fd   :  { %v1370_v49 = vmul.f32 %v2508_v48, %v2500_v37  ;;  %v1363_v50 = vpop.xlane.xlu0 %1362 }
 0x8fe   :  { %2509 = vrcp.f32 %v1363_v50 }
 0x8ff   :  { %v1374_v51 = vpack.c.bf16 %v1370_v49, %v1370_v49 }
 0x901   :  { %2237 = vmatmul.msk.bf16.vlgmr.msra.gmra.mxu0 %vm460_vm12, %v1374_v51 }
 0x904   :  { %v2510_v52 = vpop.eup %2509 }
 0x905   :  { %v1371_v53 = vmul.f32 %v2510_v52, %v2502_v38 }
 0x907   :  { %v1375_v54 = vpack.c.bf16 %v1371_v53, %v1371_v53 }
 0x909   :  { %2238 = vmatmul.msk.bf16.vlgmr.msra.gmra.mxu1 %vm460_vm12, %v1375_v54 }
 0x975   :  { %v1391_v0 = vpop.f32.mrf.mxu2 }
 0x976   :  { %v1452_v2 = vpack.c.bf16 %v1391_v0, %v1391_v0 }
 0x978   :  { %v1475_v11 = vunpack.c.l.b16 %v1452_v2 }
 0x97d   :  { %v1393_v3 = vpop.f32.mrf.mxu2  ;;  %v1410_v6 = vpop.f32.mrf.mxu3 }
 0x97e   :  { %v1453_v8 = vpack.c.bf16 %v1410_v6, %v1410_v6  ;;  %v1429_v9 = vpop.f32.mrf.mxu0 }
 0x97f   :  { %v1454_v4 = vpack.c.bf16 %v1429_v9, %v1429_v9 }
 0x980   :  { %v1476_v13 = vunpack.c.l.b16 %v1453_v8  ;;  %v2456_v8 = vld [vmem:[%s3137_s10 + $0x1] ss:$0 sm:$0xff] }
 0x981   :  { %v1521_v20 = vunpack.c.l.b16 %v1454_v4 }
 0x982   :  { %v1477_v14 = vpack.c.b16 %v1476_v13, %v1475_v11 }
 0x984   :  { %2271 = vmatmul.msk.bf16.vlgmr.msrb.gmra.mxu2 %vm383_vm10, %v1477_v14 }
 0x985   :  { %v1412_v7 = vpop.f32.mrf.mxu3 }
 0x986   :  { %v1431_v17 = vpop.f32.mrf.mxu0  ;;  %v1448_v18 = vpop.f32.mrf.mxu1 }
 0x987   :  { %v1455_v19 = vpack.c.bf16 %v1448_v18, %v1448_v18  ;;  %v2457_v17 = vld [vmem:[%s3138_s11 + $0x1] ss:$0 sm:$0xff]  ;;  %s1998_s11 = sshll.u32 %s2551_s20, 4  ;;  %s1999_s11 = int_to_ptr.vmem [resolvable:$true] %s1998_s11 }
 0x989   :  { %v1522_v23 = vunpack.c.l.b16 %v1455_v19 }
 0x98b   :  { %v1523_v24 = vpack.c.b16 %v1522_v23, %v1521_v20 }
 0x98d   :  { %2288 = vmatmul.msk.bf16.vlgmr.msra.gmra.mxu3 %vm383_vm10, %v1523_v24  ;;  %v2458_v24 = vld [vmem:[%s3140_s13 + $0x1] ss:$0 sm:$0xff] }
 0x98e   :  { %v1450_v25 = vpop.f32.mrf.mxu1 }
 0xa07   :  { %v1514_v21 = vpop.f32.mrf.mxu2 }
 0xa08   :  { %v1565_v26 = vsel %vm115_vm2, %v1514_v21, 0.0 }
 0xa0f   :  { %v1516_v30 = vpop.f32.mrf.mxu2 }
 0xa10   :  { %v1560_v12 = vpop.f32.mrf.mxu3  ;;  %v1568_v15 = vsel %vm115_vm2, %v1516_v30, 0.0 }
 0xa11   :  { %v1566_v27 = vsel %vm115_vm2, %v1560_v12, 0.0  ;;  %v2436_v12 = vld [vmem:[%s3141_s14 + $0x78] sm:$0xff] }
 0xa12   :  { %v1567_v1 = vadd.f32 %v1566_v27, %v1565_v26  ;;  %1836 = vmatpush.bf16.msrb.mxu1 %v2436_v12 }
 0xa14   :  { %v1571_v29 = vadd.f32 %v1567_v1, %v2891_v36  ;;  %v2435_v1 = vld [vmem:[%s3141_s14 + $0x70] sm:$0xff] }
 0xa16   :  { %v3016_v31 = vadd.f32 %v2455_v28, %v1571_v29  ;;  %1837 = vmatpush.bf16.msrb.mxu1 %v2435_v1 }
 0xa18   :  { %v1562_v32 = vpop.f32.mrf.mxu3  ;;  %v1584_v33 = vsel %vm115_vm2, %v3016_v31, 0.0  ;;  %v1592_v34 = vmul.f32 %v3016_v31, %v3016_v31 }
 0xa19   :  { %v1569_v35 = vsel %vm115_vm2, %v1562_v32, 0.0  ;;  %1585 = vadd.xlane.f32.xlu1 %v1584_v33 }
 0xa1a   :  { %v1570_v37 = vadd.f32 %v1569_v35, %v1568_v15  ;;  %v1594_v63 = vsel %vm115_vm2, %v1592_v34, 0.0  ;;  %v2434_v34 = vld [vmem:[%s3141_s14 + $0x68] sm:$0xff] }
 0xa1b   :  { %1595 = vadd.xlane.f32.xlu0 %v1594_v63  ;;  %1838 = vmatpush.bf16.msrb.mxu1 %v2434_v34 }
 0xa1c   :  { %v1572_v36 = vadd.f32 %v1570_v37, %v2899_v40  ;;  %v2428_v40 = vld [vmem:[%s3139_s12 + $0x18] sm:$0xff] }
 0xa1d   :  { %1674 = vmatpush.bf16.msrb.mxu0 %v2428_v40 }
 0xa1e   :  { %v3026_v10 = vadd.f32 %v2455_v28, %v1572_v36  ;;  %v2433_v36 = vld [vmem:[%s3141_s14 + $0x60] sm:$0xff] }
 0xa1f   :  { %1839 = vmatpush.bf16.msrb.mxu1 %v2433_v36 }
 0xa20   :  { %v1587_v38 = vsel %vm115_vm2, %v3026_v10, 0.0  ;;  %v1593_v39 = vmul.f32 %v3026_v10, %v3026_v10 }
 0xa21   :  { %1588 = vadd.xlane.f32.xlu2 %v1587_v38  ;;  %1675 = vmatpush.bf16.msrb.mxu0 %v2427_v47 }
 0xa22   :  { %v1597_v5 = vsel %vm115_vm2, %v1593_v39, 0.0 }
 0xa23   :  { %1598 = vadd.xlane.f32.xlu1 %v1597_v5 }
 0xa8c   :  { %v1586_v41 = vpop.xlane.xlu1 %1585 }
 0xa8d   :  { %v1590_v42 = vmul.f32 %v1586_v41, %v2694_v22 }
 0xa8e   :  { %v1596_v43 = vpop.xlane.xlu0 %1595 }
 0xa8f   :  { %v1602_v44 = vmul.f32 %v1590_v42, %v1590_v42  ;;  %v1600_v45 = vmul.f32 %v1596_v43, %v2694_v22  ;;  %v1606_v6 = vsub.f32 %v3016_v31, %v1590_v42  ;;  %v2432_v43 = vld [vmem:[%s3141_s14 + $0x58] sm:$0xff] }
 0xa90   :  { %1840 = vmatpush.bf16.msrb.mxu1 %v2432_v43 }
 0xa91   :  { %v1604_v46 = vsub.f32 %v1600_v45, %v1602_v44 }
 0xa93   :  { %v1608_v16 = vadd.f32 1e-05, %v1604_v46 }
 0xa94   :  { %v1589_v48 = vpop.xlane.xlu2 %1588 }
 0xa95   :  { %2511 = vrsqrt.f32 %v1608_v16  ;;  %v1591_v49 = vmul.f32 %v1589_v48, %v2694_v22  ;;  %vm1616_vm11 = vweird.f32 %v1608_v16 }
 0xa96   :  { %v1599_v50 = vpop.xlane.xlu1 %1598 }
 0xa97   :  { %v1603_v51 = vmul.f32 %v1591_v49, %v1591_v49  ;;  %v1601_v52 = vmul.f32 %v1599_v50, %v2694_v22  ;;  %v1607_v13 = vsub.f32 %v3026_v10, %v1591_v49  ;;  %v2431_v49 = vld [vmem:[%s3141_s14 + $0x50] sm:$0xff] }
 0xa98   :  { %1841 = vmatpush.bf16.msrb.mxu1 %v2431_v49 }
 0xa99   :  { %v1605_v53 = vsub.f32 %v1601_v52, %v1603_v51 }
 0xa9b   :  { %v2512_v54 = vpop.eup %2511  ;;  %v1609_v55 = vadd.f32 1e-05, %v1605_v53 }
 0xa9c   :  { %v1611_v56 = vmul.f32 %v2512_v54, %v1608_v16  ;;  %vm1617_vm10 = vweird.f32 %v2512_v54 }
 0xa9d   :  { %2513 = vrsqrt.f32 %v1609_v55  ;;  %vm1618_vm12 = vmor %vm1616_vm11, %vm1617_vm10  ;;  %vm1626_vm7 = vweird.f32 %v1609_v55 }
 0xa9e   :  { %v1612_v57 = vmul.f32 %v2512_v54, %v1611_v56 }
 0xaa0   :  { %v1613_v58 = vmul.f32 0.5, %v1612_v57  ;;  %v2430_v57 = vld [vmem:[%s3141_s14 + $0x48] sm:$0xff] }
 0xaa1   :  { %1842 = vmatpush.bf16.msrb.mxu1 %v2430_v57 }
 0xaa2   :  { %v1614_v59 = vsub.f32 1.5, %v1613_v58 }
 0xaa3   :  { %v2514_v60 = vpop.eup %2513 }
 0xaa4   :  { %v1615_v61 = vmul.f32 %v2512_v54, %v1614_v59  ;;  %v1621_v62 = vmul.f32 %v2514_v60, %v1609_v55  ;;  %vm1627_vm6 = vweird.f32 %v2514_v60 }
 0xaa5   :  { %vm1628_vm8 = vmor %vm1626_vm7, %vm1627_vm6  ;;  %vm1991_vm7 = vcmask 8192  }
 0xaa6   :  { %v1622_v0 = vmul.f32 %v2514_v60, %v1621_v62  ;;  %v1619_v2 = vsel %vm1618_vm12, %v2512_v54, %v1615_v61 }
 0xaa7   :  { %v1630_v9 = vmul.f32 %v1619_v2, %v1606_v6 }
 0xaa8   :  { %v1623_v3 = vmul.f32 0.5, %v1622_v0  ;;  %v2429_v0 = vld [vmem:[%s3141_s14 + $0x40] sm:$0xff] }
 0xaa9   :  { %v1635_v4 = vmul.f32 %v2456_v8, %v1630_v9  ;;  %1843 = vmatpush.bf16.msrb.mxu1 %v2429_v0 }
 0xaaa   :  { %v1624_v22 = vsub.f32 1.5, %v1623_v3 }
 0xaab   :  { %v1640_v19 = vadd.f32 %v2457_v17, %v1635_v4 }
 0xaac   :  { %v1625_v11 = vmul.f32 %v2514_v60, %v1624_v22 }
 0xaae   :  { %v1629_v14 = vsel %vm1628_vm8, %v2514_v60, %v1625_v11 }
 0xaaf   :  { %v1631_v7 = vmul.f32 %v1629_v14, %v1607_v13 }
 0xab1   :  { %v1636_v18 = vmul.f32 %v2456_v8, %v1631_v7 }
 0xab3   :  { %v1641_v20 = vadd.f32 %v2457_v17, %v1636_v18 }
 0xab5   :  { %v1642_v23 = vpack.c.bf16 %v1641_v20, %v1640_v19 }
 0xab7   :  { %2305 = vmatmul.msk.bf16.vlgmr.msrb.gmra.mxu0 %vm115_vm2, %v1642_v23 }
 0xb34   :  { %v1677_v25 = vpop.f32.mrf.mxu0 }
 0xb35   :  { %v3055_v21 = vadd.f32 %v2458_v24, %v1677_v25 }
 0xb37   :  { %v3061_v26 = vmul.f32 0.70710677, %v3055_v21 }
 0xb39   :  { %v1686_v27 = vmul.f32 %v3061_v26, %v3061_v26 }
 0xb3b   :  { %v1687_v28 = vmin.f32 %v1686_v27, 16.0 }
 0xb3c   :  { %v1679_v29 = vpop.f32.mrf.mxu0 }
 0xb3d   :  { %v1688_v30 = vmul.f32 2.1237322e-06, %v1687_v28  ;;  %v1699_v32 = vmul.f32 3.8918573e-05, %v1687_v28  ;;  %v3068_v33 = vadd.f32 %v2458_v24, %v1679_v29 }
 0xb3f   :  { %v1689_v15 = vadd.f32 0.00028619796, %v1688_v30  ;;  %v1700_v35 = vadd.f32 0.001143296, %v1699_v32  ;;  %v3074_v37 = vmul.f32 0.70710677, %v3068_v33 }
 0xb41   :  { %v1701_v63 = vmul.f32 %v1700_v35, %v1687_v28  ;;  %v1726_v38 = vmul.f32 %v3074_v37, %v3074_v37  ;;  %v1690_v39 = vmul.f32 %v1689_v15, %v1687_v28 }
 0xb43   :  { %v1702_v5 = vadd.f32 0.014752088, %v1701_v63  ;;  %v1727_v41 = vmin.f32 %v1726_v38, 16.0  ;;  %v1691_v40 = vadd.f32 0.0036580483, %v1690_v39 }
 0xb45   :  { %v1703_v42 = vmul.f32 %v1702_v5, %v1687_v28  ;;  %v1728_v44 = vmul.f32 2.1237322e-06, %v1727_v41  ;;  %v1739_v45 = vmul.f32 3.8918573e-05, %v1727_v41  ;;  %v1692_v52 = vmul.f32 %v1691_v40, %v1687_v28 }
 0xb47   :  { %v1704_v46 = vadd.f32 0.112945676, %v1703_v42  ;;  %v1729_v47 = vadd.f32 0.00028619796, %v1728_v44  ;;  %v1740_v16 = vadd.f32 0.001143296, %v1739_v45 }
 0xb48   :  { %v1693_v59 = vadd.f32 0.05243302, %v1692_v52 }
 0xb49   :  { %v1705_v48 = vmul.f32 %v1704_v46, %v1687_v28  ;;  %v1730_v50 = vmul.f32 %v1729_v47, %v1727_v41  ;;  %v1741_v51 = vmul.f32 %v1740_v16, %v1727_v41  ;;  %v1682_v46 = vmul.f32 0.5, %v3055_v21  ;;  %v2439_v21 = vld [vmem:[%s3144_s17] sm:$0xff] }
 0xb4a   :  { %v1694_v3 = vmul.f32 %v1693_v59, %v1687_v28  ;;  %v1683_v47 = vmul.f32 0.5, %v3068_v33  ;;  %v2437_v33 = vld [vmem:[%s3143_s16] sm:$0xff] }
 0xb4b   :  { %v1706_v53 = vadd.f32 0.4994258, %v1705_v48  ;;  %v1731_v54 = vadd.f32 0.0036580483, %v1730_v50  ;;  %v1742_v55 = vadd.f32 0.014752088, %v1741_v51 }
 0xb4c   :  { %v1695_v11 = vadd.f32 0.18741608, %v1694_v3  ;;  %v2440_v51 = vld [vmem:[%s3144_s17 + $0x8] sm:$0xff] }
 0xb4d   :  { %v1707_v56 = vmul.f32 %v1706_v53, %v1687_v28  ;;  %v1743_v58 = vmul.f32 %v1742_v55, %v1727_v41  ;;  %v1732_v61 = vmul.f32 %v1731_v54, %v1727_v41  ;;  %1899 = vmatpush.bf16.msra.mxu2 %v2440_v51  ;;  %v2459_v54 = vld [vmem:[%s3142_s15 + $0x1] ss:$0 sm:$0xff] }
 0xb4e   :  { %v1696_v17 = vmul.f32 %v1695_v11, %v1687_v28 }
 0xb4f   :  { %v1708_v60 = vadd.f32 1.0, %v1707_v56  ;;  %v1744_v62 = vadd.f32 0.112945676, %v1743_v58  ;;  %v1733_v6 = vadd.f32 0.05243302, %v1732_v61 }
 0xb50   :  { %v1697_v25 = vadd.f32 1.1283791, %v1696_v17 }
 0xb51   :  { %2515 = vrcp.f32 %v1708_v60  ;;  %v1745_v2 = vmul.f32 %v1744_v62, %v1727_v41  ;;  %v1734_v14 = vmul.f32 %v1733_v6, %v1727_v41  ;;  %v1720_v19 = vand.u32 2147483648, %v1708_v60  ;;  %1900 = vmatpush.bf16.msra.mxu2 %v2439_v21 }
 0xb52   :  { %v1718_v23 = vand.u32 2147483647, %v1708_v60  ;;  %vm1714_vm13 = vweird.f32 %v1708_v60  ;;  %v1698_v34 = vmul.f32 %v1697_v25, %v3061_v26 }
 0xb53   :  { %v1746_v22 = vadd.f32 0.4994258, %v1745_v2  ;;  %v1735_v20 = vadd.f32 0.18741608, %v1734_v14  ;;  %v1721_v1 = vor.u32 1.1754944e-38, %v1720_v19 }
 0xb54   :  { %vm1719_vm15 = vcmp.eq.f32.partialorder %v1718_v23, 8.507059e+37 }
 0xb55   :  { %v1747_v8 = vmul.f32 %v1746_v22, %v1727_v41  ;;  %v1736_v29 = vmul.f32 %v1735_v20, %v1727_v41  ;;  %v1965_v20 = vld [vmem:[#allocation2] sm:$0x1] }
 0xb57   :  { %v2516_v9 = vpop.eup %2515  ;;  %v1748_v4 = vadd.f32 1.0, %v1747_v8  ;;  %v1737_v28 = vadd.f32 1.1283791, %v1736_v29 }
 0xb58   :  { %v1710_v13 = vmul.f32 %v2516_v9, %v1708_v60  ;;  %vm1715_vm9 = vweird.f32 %v2516_v9 }
 0xb59   :  { %2517 = vrcp.f32 %v1748_v4  ;;  %vm1716_vm14 = vmor %vm1714_vm13, %vm1715_vm9  ;;  %v1760_v35 = vand.u32 2147483648, %v1748_v4  ;;  %v1758_v38 = vand.u32 2147483647, %v1748_v4  ;;  %vm1754_vm1 = vweird.f32 %v1748_v4 }
 0xb5a   :  { %v1711_v7 = vsub.f32 1.0, %v1710_v13  ;;  %v1738_v43 = vmul.f32 %v1737_v28, %v3074_v37  ;;  %v2438_v37 = vld [vmem:[%s3143_s16 + $0x8] sm:$0xff] }
 0xb5b   :  { %v1761_v5 = vor.u32 1.1754944e-38, %v1760_v35  ;;  %vm1759_vm4 = vcmp.eq.f32.partialorder %v1758_v38, 8.507059e+37  ;;  %1931 = vmatpush.bf16.msrb.mxu3 %v2438_v37  ;;  %v1963_v38 = vld [vmem:[%s3146_s19] sm:$0x1] }
 0xb5c   :  { %v1712_v18 = vmul.f32 %v2516_v9, %v1711_v7 }
 0xb5e   :  { %v1713_v24 = vadd.f32 %v2516_v9, %v1712_v18 }
 0xb5f   :  { %v2518_v12 = vpop.eup %2517  ;;  %1932 = vmatpush.bf16.msrb.mxu3 %v2437_v33 }
 0xb60   :  { %v1717_v27 = vsel %vm1716_vm14, %v2516_v9, %v1713_v24  ;;  %v1750_v30 = vmul.f32 %v2518_v12, %v1748_v4  ;;  %vm1755_vm0 = vweird.f32 %v2518_v12  ;;  %v2550_v24 = vmov 0  }
 0xb61   :  { %v1722_v32 = vsel %vm1719_vm15, %v1721_v1, %v1717_v27  ;;  %vm1756_vm3 = vmor %vm1754_vm1, %vm1755_vm0  ;;  %2444 = vset.pattern.permute.xlu2 %v2550_v24  ;;  %2445 = vset.pattern.permute.xlu0 %v2550_v24 }
 0xb62   :  { %v1751_v15 = vsub.f32 1.0, %v1750_v30  ;;  %v1723_v63 = vmul.f32 %v1722_v32, %v1698_v34  ;;  %1968 = vperm.xlu2 %2444, %v1965_v20  }
 0xb64   :  { %v1752_v36 = vmul.f32 %v2518_v12, %v1751_v15  ;;  %v2306_v42 = vclamps-f32 %v1723_v63, 1.0 }
 0xb66   :  { %v1753_v39 = vadd.f32 %v2518_v12, %v1752_v36  ;;  %v1766_v40 = vadd.f32 1.0, %v2306_v42 }
 0xb68   :  { %v1757_v41 = vsel %vm1756_vm3, %v2518_v12, %v1753_v39  ;;  %v1768_v48 = vmul.f32 %v1766_v40, %v1682_v46 }
 0xb69   :  { %v1762_v44 = vsel %vm1759_vm4, %v1761_v5, %v1757_v41 }
 0xb6a   :  { %v1763_v45 = vmul.f32 %v1762_v44, %v1738_v43 }
 0xb6c   :  { %v2307_v26 = vclamps-f32 %v1763_v45, 1.0 }
 0xb6e   :  { %v1767_v16 = vadd.f32 1.0, %v2307_v26 }
 0xb70   :  { %v1769_v49 = vmul.f32 %v1767_v16, %v1683_v47 }
 0xb72   :  { %v1770_v50 = vpack.c.bf16 %v1769_v49, %v1768_v48 }
 0xb74   :  { %1844 = vmatmul.bf16.vlgmr.msrb.gmra.mxu1 %v1770_v50 }
 0xbbc   :  { %v1969_v39 = vpop.permute.xlu2 %1968 }
 0xbbd   :  { %v1971_v5 = vperm.slane %v1969_v39, 0 }
 0xbf1   :  { %v1845_v52 = vpop.f32.mrf.mxu1 }
 0xbf2   :  { %v1850_v53 = vadd.f32 %v1845_v52, %v3016_v31 }
 0xbf4   :  { %v1857_v55 = vadd.f32 %v2459_v54, %v1850_v53 }
 0xbf6   :  { %v1859_v57 = vpack.c.bf16 %v1857_v55, %v1857_v55 }
 0xbf8   :  { %v1871_v60 = vunpack.c.l.b16 %v1859_v57 }
 0xbf9   :  { %v1847_v56 = vpop.f32.mrf.mxu1 }
 0xbfa   :  { %v1851_v58 = vadd.f32 %v1847_v56, %v3026_v10  ;;  %v1873_v0 = vrot.slane %v1871_v60, 7  ;;  %v1906_v2 = vrot.slane %v1871_v60, 3  ;;  %v2460_v10 = vld [vmem:[%s3145_s18] ss:$0 sm:$0xff] }
 0xbfc   :  { %v1858_v59 = vadd.f32 %v2459_v54, %v1851_v58 }
 0xbfe   :  { %v1860_v61 = vpack.c.bf16 %v1858_v59, %v1858_v59 }
 0xc00   :  { %v1872_v62 = vunpack.c.l.b16 %v1860_v61 }
 0xc02   :  { %v1874_v3 = vrot.slane %v1872_v62, 6  ;;  %v1907_v6 = vrot.slane %v1872_v62, 2 }
 0xc04   :  { %v1876_v22 = vsel %vm1875_vm5, %v1874_v3, %v1873_v0  ;;  %v1908_v31 = vsel %vm1875_vm5, %v1907_v6, %v1906_v2 }
 0xc05   :  { %v1877_v8 = vpack.c.b16 %v1876_v22, %v1876_v22  ;;  %v1909_v9 = vpack.c.b16 %v1908_v31, %v1908_v31 }
 0xc07   :  { %2365 = vmatmul.msk.bf16.vlgmr.msra.gmra.mxu2 %vm115_vm2, %v1877_v8  ;;  %2374 = vmatmul.msk.bf16.vlgmr.msrb.gmra.mxu3 %vm115_vm2, %v1909_v9 }
 0xc8a   :  { %v1902_v11 = vpop.f32.mrf.mxu2  ;;  %v1934_v13 = vpop.f32.mrf.mxu3 }
 0xc8b   :  { %v1935_v14 = vadd.f32 %v1934_v13, %v1902_v11 }
 0xc8d   :  { %v1942_v4 = vadd.f32 %v2460_v10, %v1935_v14 }
 0xc8f   :  { %v2375_v7 = vmul.f32 -1.442695, %v1942_v4 }
 0xc91   :  { %2519 = vpow2.f32 %v2375_v7 }
 0xc92   :  { %v1904_v17 = vpop.f32.mrf.mxu2  ;;  %v1936_v18 = vpop.f32.mrf.mxu3 }
 0xc97   :  { %v2520_v19 = vpop.eup %2519 }
 0xc98   :  { %v1946_v23 = vadd.f32 1.0, %v2520_v19 }
 0xc9a   :  { %2521 = vrcp.f32 %v1946_v23  ;;  %v1958_v1 = vand.u32 2147483648, %v1946_v23  ;;  %v1956_v30 = vand.u32 2147483647, %v1946_v23  ;;  %vm1952_vm11 = vweird.f32 %v1946_v23 }
 0xc9c   :  { %v1959_v34 = vor.u32 1.1754944e-38, %v1958_v1  ;;  %vm1957_vm6 = vcmp.eq.f32.partialorder %v1956_v30, 8.507059e+37 }
 0xca0   :  { %v2522_v25 = vpop.eup %2521 }
 0xca1   :  { %v1948_v12 = vmul.f32 %v2522_v25, %v1946_v23  ;;  %vm1953_vm10 = vweird.f32 %v2522_v25 }
 0xca2   :  { %vm1954_vm12 = vmor %vm1952_vm11, %vm1953_vm10 }
 0xca3   :  { %v1949_v27 = vsub.f32 1.0, %v1948_v12 }
 0xca5   :  { %v1950_v29 = vmul.f32 %v2522_v25, %v1949_v27 }
 0xca7   :  { %v1951_v32 = vadd.f32 %v2522_v25, %v1950_v29 }
 0xca9   :  { %v1955_v15 = vsel %vm1954_vm12, %v2522_v25, %v1951_v32 }
 0xcaa   :  { %v1960_v28 = vsel %vm1957_vm6, %v1959_v34, %v1955_v15 }
 0xcab   :  { %v1962_v35 = vmul.f32 %v1960_v28, %v1942_v4 }
 0xcad   :  { %v1964_v63 = vpack.c.bf16 %v1962_v35, %v1962_v35 }
 0xcaf   :  { %v1976_v36 = vsel %vm115_vm2, %v1964_v63, 0 }
 0xcb0   :  { %1985 = vmatpush.bf16.xpose.msra.mxu0 %v1976_v36 }
 0xcb7   :  { %2376 = vmatmul.msk.bf16.vlgmr.msra.gmra.mxu0 %vm115_vm2, %v1963_v38 }
 0xd34   :  { %v1987_v42 = vpop.f32.mrf.mxu0 }
 0xd35   :  { %v1988_v43 = vadd.f32 %v1987_v42, %v1971_v5 }
 0xd37   :  { %1992 = vst.msk [vmem:[#allocation3] sm:$0x1] %vm1991_vm7, %v1988_v43 }
 0xd38   :  { %2003 = dma.vmem_to_hbm [thread:$0]  %s1999_s11, 16, %s2001_s23, [#allocation4]  }
 0xd3c   :  { %v1989_v41 = vpop.f32.mrf.mxu0 }
 0xd3d   :  { %2547 = dma.done.wait [#allocation4], 16  }
 0xd3e   :  { %2548 = vsyncadd [#allocation4], 4294967280 }
 0xd3f   :  { %2008 = vsyncpa [#allocation4], 1 }

</bundles_post_ra>
